<compile_context>
chip_gen: v7x
topology: tpu7x:2x2x1
jax: 0.10.0
libtpu: 0.0.40
codegen_flags: <defaults>
</compile_context>

<pallas_src>
import numpy as np
import jax
import jax.numpy as jnp
from jax.experimental import pallas as pl
from jax.experimental.pallas import tpu as pltpu

LN_EPS = 1e-5       # torch.nn.LayerNorm default
L2_EPS = 1e-12      # F.normalize default


# ---------------------------------------------------------------------------
# Fused Pallas kernel
# ---------------------------------------------------------------------------

def _geoloc_kernel(img_ref, wp_ref, bp_ref, wm_ref, bm_ref, must_ref,
                   g0_ref, b0_ref, w1_ref, b1_ref, w2_ref, b2_ref,
                   g1_ref, b1n_ref,
                   pred_ref, mw_ref, emb_ref, feat_ref):
    wdt = wp_ref.dtype   # f32 or bf16 (matmul weight dtype); accumulation is always f32

    # ---- backbone stand-in: global-avg-pool folded into projection weight ----
    # img_ref: (B, C*HW), wp_ref: (C*HW, F) already divided by HW.
    feat = (
        jnp.dot(img_ref[...].astype(wdt), wp_ref[...],
                preferred_element_type=jnp.float32)
        + bp_ref[...]
    )
    feat_ref[...] = feat

    # ---- MVMF head: Linear -> softmax(dim=1) ----
    logits = (
        jnp.dot(feat.astype(wm_ref.dtype), wm_ref[...],
                preferred_element_type=jnp.float32)
        + bm_ref[...]
    )
    m = jnp.max(logits, axis=1, keepdims=True)
    e = jnp.exp(logits - m)
    denom = jnp.sum(e, axis=1, keepdims=True)
    mw = e * pl.reciprocal(denom, approx=False)
    mw_ref[...] = mw

    # ---- prediction: first-occurrence argmax over mixtures, gather mus via one-hot matmul
    B, M = logits.shape
    col = jax.lax.broadcasted_iota(jnp.int32, (B, M), 1)
    is_max = logits == m                                 # softmax is monotonic
    idx = jnp.min(jnp.where(is_max, col, M), axis=1, keepdims=True)   # first argmax
    onehot = (col == idx).astype(jnp.float32)
    pred_ref[...] = jnp.dot(onehot, must_ref[...],       # must_ref: (M, 2) = mus.T
                            preferred_element_type=jnp.float32)

    # ---- RRM head: LayerNorm -> fc1+ReLU -> fc2 + residual -> LayerNorm -> L2 normalize
    def layernorm(v, g, b):
        mu = jnp.mean(v, axis=-1, keepdims=True)
        var = jnp.mean((v - mu) ** 2, axis=-1, keepdims=True)
        return (v - mu) * jax.lax.rsqrt(var + LN_EPS) * g + b

    y = layernorm(feat, g0_ref[...], b0_ref[...])
    h = jnp.maximum(
        jnp.dot(y.astype(w1_ref.dtype), w1_ref[...],
                preferred_element_type=jnp.float32) + b1_ref[...],
        0.0,
    )
    z = (
        jnp.dot(h.astype(w2_ref.dtype), w2_ref[...],
                preferred_element_type=jnp.float32)
        + b2_ref[...]
        + y
    )
    z = layernorm(z, g1_ref[...], b1n_ref[...])
    sumsq = jnp.sum(z * z, axis=-1, keepdims=True)
    emb_ref[...] = z * jax.lax.rsqrt(jnp.maximum(sumsq, L2_EPS * L2_EPS))


# ---------------------------------------------------------------------------
# Wrapper (single un-gridded pallas_call, everything whole-array in VMEM)
# ---------------------------------------------------------------------------

_VSPEC = pl.BlockSpec(memory_space=pltpu.MemorySpace.VMEM)


def prepare_kernel_params(params, spatial, use_bf16_weights=False):
    """One-time param transform: fold avg-pool into wp, transpose mus, optional bf16 weights."""
    wdt = jnp.bfloat16 if use_bf16_weights else jnp.float32
    return dict(
        wp_pool=(jnp.repeat(params["wp"], spatial, axis=0) / spatial).astype(wdt),
        bp=params["bp"],
        wm=params["wm"].astype(wdt),
        bm=params["bm"],
        mus_t=params["mus"].T.astype(jnp.float32),        # (M, 2) [lat, lon]
        g0=params["g0"], b0=params["b0"],
        w1=params["w1"].astype(wdt), b1=params["b1"],
        w2=params["w2"].astype(wdt), b2=params["b2"],
        g1=params["g1"], b1n=params["b1n"],
    )


def geoloc_forward(kparams, images):
    """GeoLocModel.forward: (prediction, cell_probs, embeddings, features)."""
    B, C, H, W = images.shape
    img2d = images.reshape(B, C * H * W)                  # (B, C*HW), lane-dense f32
    F_ = kparams["wp_pool"].shape[1]
    M = kparams["wm"].shape[1]

    args = (img2d, kparams["wp_pool"], kparams["bp"], kparams["wm"], kparams["bm"],
            kparams["mus_t"], kparams["g0"], kparams["b0"], kparams["w1"], kparams["b1"],
            kparams["w2"], kparams["b2"], kparams["g1"], kparams["b1n"])

    out_shape = (
        jax.ShapeDtypeStruct((B, 2), jnp.float32),        # prediction [lat, lon]
        jax.ShapeDtypeStruct((B, M), jnp.float32),        # cell_probs (mixture weights)
        jax.ShapeDtypeStruct((B, F_), jnp.float32),       # embeddings
        jax.ShapeDtypeStruct((B, F_), jnp.float32),       # features
    )
    # NOTE: for serving batches (B >= 128) add a batch grid axis marked "parallel" so the
    # second v7x TensorCore gets work; at B=8 a single un-gridded call is fastest.
    return pl.pallas_call(
        _geoloc_kernel,
        out_shape=out_shape,
        in_specs=[_VSPEC] * len(args),
        out_specs=[_VSPEC] * len(out_shape),
    )(*args)


# ---------------------------------------------------------------------------
# Deterministic parameter init (synthetic; shapes follow the module __init__)
# ---------------------------------------------------------------------------

def init_params(key, in_ch=4, feat_dim=256, hidden=512, num_mixtures=128):
    ks = jax.random.split(key, 6)

    def xavier(k, shape):
        limit = np.sqrt(6.0 / (shape[0] + shape[1]))
        return jax.random.uniform(k, shape, jnp.float32, -limit, limit)

    return dict(
        # backbone stand-in projection
        wp=xavier(ks[0], (in_ch, feat_dim)),
        bp=jnp.zeros((1, feat_dim), jnp.float32),
        # MixtureWeights: single Linear(feat_dim -> num_mixtures)
        wm=xavier(ks[1], (feat_dim, num_mixtures)),
        bm=jnp.zeros((1, num_mixtures), jnp.float32),
        # VectorizedMixtureVMF.mus: (2, num_mixtures) [lat; lon]
        mus=jnp.stack(
            [
                jax.random.uniform(ks[2], (num_mixtures,), jnp.float32, -90.0, 90.0),
                jax.random.uniform(ks[3], (num_mixtures,), jnp.float32, -180.0, 180.0),
            ],
            axis=0,
        ),
        # RetrievalModule.norm (LayerNorm init: ones / zeros)
        g0=jnp.ones((1, feat_dim), jnp.float32),
        b0=jnp.zeros((1, feat_dim), jnp.float32),
        # Residual.fc1 / fc2 (xavier_uniform, zero bias per _init_weights)
        w1=xavier(ks[4], (feat_dim, hidden)),
        b1=jnp.zeros((1, hidden), jnp.float32),
        w2=xavier(ks[5], (hidden, feat_dim)),
        b2=jnp.zeros((1, feat_dim), jnp.float32),
        # Residual.norm
        g1=jnp.ones((1, feat_dim), jnp.float32),
        b1n=jnp.zeros((1, feat_dim), jnp.float32),
    )


# ---------------------------------------------------------------------------
# Pure-JAX reference (module semantics, for correctness check)
# ---------------------------------------------------------------------------

def reference_forward(p, images):
    B, C, H, W = images.shape
    pooled = images.reshape(B, C, H * W).mean(axis=2)
    feats = pooled @ p["wp"] + p["bp"]
    mw = jax.nn.softmax(feats @ p["wm"] + p["bm"], axis=1)
    idx = jnp.argmax(mw, axis=1)
    pred = p["mus"][:, idx].T

    def ln(v, g, b):
        mu = v.mean(-1, keepdims=True)
        var = ((v - mu) ** 2).mean(-1, keepdims=True)
        return (v - mu) / jnp.sqrt(var + LN_EPS) * g + b

    y = ln(feats, p["g0"], p["b0"])
    h = jax.nn.relu(y @ p["w1"] + p["b1"])
    z = ln(h @ p["w2"] + p["b2"] + y, p["g1"], p["b1n"])
    emb = z / jnp.maximum(jnp.linalg.norm(z, axis=-1, keepdims=True), L2_EPS)
    return pred, mw, emb, feats


# ---------------------------------------------------------------------------

if __name__ == "__main__":
    key = jax.random.PRNGKey(0)
    pkey, ikey = jax.random.split(key)

    B, C, H, W = 8, 4, 16, 16
    params = init_params(pkey, in_ch=C, feat_dim=256, hidden=512, num_mixtures=128)
    images = jax.random.normal(ikey, (B, C, H, W), jnp.float32)

    fwd = jax.jit(geoloc_forward)

    # f32 path (exact check vs module semantics)
    kparams = prepare_kernel_params(params, H * W, use_bf16_weights=False)
    outputs = jax.block_until_ready(fwd(kparams, images))
    prediction, cell_probs, embeddings, features = outputs

    ref = reference_forward(params, images)
    for got, want, name in zip(outputs, ref,
                               ("prediction", "cell_probs", "embeddings", "features")):
        np.testing.assert_allclose(np.asarray(got), np.asarray(want),
                                   rtol=1e-4, atol=1e-4, err_msg=name)

    assert prediction.shape == (B, 2)
    assert cell_probs.shape == (B, 128)
    assert embeddings.shape == (B, 256)
    assert features.shape == (B, 256)

    # bf16-weight path (v6e/v7x MXU optimization): run it and sanity-check with relaxed
    # tolerance; prediction is skipped (argmax of near-uniform synthetic logits can flip).
    kparams_bf16 = prepare_kernel_params(params, H * W, use_bf16_weights=True)
    out_bf16 = jax.block_until_ready(fwd(kparams_bf16, images))
    for got, want, name in zip(out_bf16[1:], ref[1:],
                               ("cell_probs", "embeddings", "features")):
        np.testing.assert_allclose(np.asarray(got), np.asarray(want),
                                   rtol=5e-2, atol=5e-3, err_msg=name + " (bf16)")

    print("KERNEL_OK")
</pallas_src>

<mosaic_0001>
module attributes {stable_mosaic.version = 11 : i64} {
  func.func @_geoloc_kernel(%arg0: memref<8x1024xf32, #tpu.memory_space<vmem>>, %arg1: memref<1024x256xf32, #tpu.memory_space<vmem>>, %arg2: memref<1x256xf32, #tpu.memory_space<vmem>>, %arg3: memref<256x128xf32, #tpu.memory_space<vmem>>, %arg4: memref<1x128xf32, #tpu.memory_space<vmem>>, %arg5: memref<128x2xf32, #tpu.memory_space<vmem>>, %arg6: memref<1x256xf32, #tpu.memory_space<vmem>>, %arg7: memref<1x256xf32, #tpu.memory_space<vmem>>, %arg8: memref<256x512xf32, #tpu.memory_space<vmem>>, %arg9: memref<1x512xf32, #tpu.memory_space<vmem>>, %arg10: memref<512x256xf32, #tpu.memory_space<vmem>>, %arg11: memref<1x256xf32, #tpu.memory_space<vmem>>, %arg12: memref<1x256xf32, #tpu.memory_space<vmem>>, %arg13: memref<1x256xf32, #tpu.memory_space<vmem>>, %arg14: memref<8x2xf32, #tpu.memory_space<vmem>>, %arg15: memref<8x128xf32, #tpu.memory_space<vmem>>, %arg16: memref<8x256xf32, #tpu.memory_space<vmem>>, %arg17: memref<8x256xf32, #tpu.memory_space<vmem>>) attributes {dimension_semantics = [], scalar_prefetch = 0 : i64, scratch_operands = 0 : i64, tpu.core_type = #tpu.core_type<tc>} {
    %c0 = arith.constant 0 : index
    %c0_0 = arith.constant 0 : index
    %0 = vector.load %arg0[%c0, %c0_0] : memref<8x1024xf32, #tpu.memory_space<vmem>>, vector<8x1024xf32>
    %c0_1 = arith.constant 0 : index
    %c0_2 = arith.constant 0 : index
    %1 = vector.load %arg1[%c0_1, %c0_2] : memref<1024x256xf32, #tpu.memory_space<vmem>>, vector<1024x256xf32>
    %cst = arith.constant dense<0.000000e+00> : vector<8x256xf32>
    %2 = tpu.matmul %0, %1, %cst {dimension_numbers = #tpu.dot_dimension_numbers<[1], [0], [0], [1], [0, 0, 1, 1], [], []>} : vector<8x1024xf32>, vector<1024x256xf32>, vector<8x256xf32> -> vector<8x256xf32>
    %c0_3 = arith.constant 0 : index
    %c0_4 = arith.constant 0 : index
    %3 = vector.load %arg2[%c0_3, %c0_4] : memref<1x256xf32, #tpu.memory_space<vmem>>, vector<1x256xf32>
    %4 = vector.broadcast %3 : vector<1x256xf32> to vector<8x256xf32>
    %5 = arith.addf %2, %4 : vector<8x256xf32>
    %c0_5 = arith.constant 0 : index
    %c0_6 = arith.constant 0 : index
    %6 = vector.load %arg17[%c0_5, %c0_6] : memref<8x256xf32, #tpu.memory_space<vmem>>, vector<8x256xf32>
    tpu.vector_store %arg17[%c0_5, %c0_6], %5 {strides = array<i32>} : memref<8x256xf32, #tpu.memory_space<vmem>>, vector<8x256xf32>,
    %c0_7 = arith.constant 0 : index
    %c0_8 = arith.constant 0 : index
    %7 = vector.load %arg3[%c0_7, %c0_8] : memref<256x128xf32, #tpu.memory_space<vmem>>, vector<256x128xf32>
    %cst_9 = arith.constant dense<0.000000e+00> : vector<8x128xf32>
    %8 = tpu.matmul %5, %7, %cst_9 {dimension_numbers = #tpu.dot_dimension_numbers<[1], [0], [0], [1], [0, 0, 1, 1], [], []>} : vector<8x256xf32>, vector<256x128xf32>, vector<8x128xf32> -> vector<8x128xf32>
    %c0_10 = arith.constant 0 : index
    %c0_11 = arith.constant 0 : index
    %9 = vector.load %arg4[%c0_10, %c0_11] : memref<1x128xf32, #tpu.memory_space<vmem>>, vector<1x128xf32>
    %10 = vector.broadcast %9 : vector<1x128xf32> to vector<8x128xf32>
    %11 = arith.addf %8, %10 : vector<8x128xf32>
    %cst_12 = arith.constant dense<0xFF800000> : vector<8xf32>
    %12 = vector.multi_reduction <maximumf>, %11, %cst_12 [1] : vector<8x128xf32> to vector<8xf32>
    %13 = vector.shape_cast %12 : vector<8xf32> to vector<8x1xf32>
    %14 = vector.broadcast %13 : vector<8x1xf32> to vector<8x128xf32>
    %15 = arith.subf %11, %14 : vector<8x128xf32>
    %16 = math.exp %15 : vector<8x128xf32>
    %cst_13 = arith.constant dense<0.000000e+00> : vector<8xf32>
    %17 = vector.multi_reduction <add>, %16, %cst_13 [1] : vector<8x128xf32> to vector<8xf32>
    %18 = vector.shape_cast %17 : vector<8xf32> to vector<8x1xf32>
    %19 = tpu.reciprocal %18 : vector<8x1xf32> -> vector<8x1xf32>
    %20 = vector.broadcast %19 : vector<8x1xf32> to vector<8x128xf32>
    %21 = arith.mulf %16, %20 : vector<8x128xf32>
    %c0_14 = arith.constant 0 : index
    %c0_15 = arith.constant 0 : index
    %22 = vector.load %arg15[%c0_14, %c0_15] : memref<8x128xf32, #tpu.memory_space<vmem>>, vector<8x128xf32>
    tpu.vector_store %arg15[%c0_14, %c0_15], %21 {strides = array<i32>} : memref<8x128xf32, #tpu.memory_space<vmem>>, vector<8x128xf32>,
    %23 = tpu.iota {dimensions = array<i32: 1>} : vector<8x128xi32>
    %24 = vector.broadcast %13 : vector<8x1xf32> to vector<8x128xf32>
    %25 = arith.cmpf oeq, %11, %24 : vector<8x128xf32>
    %c128_i32 = arith.constant 128 : i32
    %26 = vector.broadcast %c128_i32 : i32 to vector<8x128xi32>
    %27 = arith.select %25, %23, %26 : vector<8x128xi1>, vector<8x128xi32>
    %cst_16 = arith.constant dense<2147483647> : vector<8xi32>
    %28 = vector.multi_reduction <minsi>, %27, %cst_16 [1] : vector<8x128xi32> to vector<8xi32>
    %29 = vector.shape_cast %28 : vector<8xi32> to vector<8x1xi32>
    %30 = vector.broadcast %29 : vector<8x1xi32> to vector<8x128xi32>
    %31 = arith.cmpi eq, %23, %30 : vector<8x128xi32>
    %32 = arith.extui %31 : vector<8x128xi1> to vector<8x128xi32>
    %33 = arith.sitofp %32 : vector<8x128xi32> to vector<8x128xf32>
    %c0_17 = arith.constant 0 : index
    %c0_18 = arith.constant 0 : index
    %34 = vector.load %arg5[%c0_17, %c0_18] : memref<128x2xf32, #tpu.memory_space<vmem>>, vector<128x2xf32>
    %cst_19 = arith.constant dense<0.000000e+00> : vector<8x2xf32>
    %35 = tpu.matmul %33, %34, %cst_19 {dimension_numbers = #tpu.dot_dimension_numbers<[1], [0], [0], [1], [0, 0, 1, 1], [], []>} : vector<8x128xf32>, vector<128x2xf32>, vector<8x2xf32> -> vector<8x2xf32>
    %c0_20 = arith.constant 0 : index
    %c0_21 = arith.constant 0 : index
    %36 = vector.load %arg14[%c0_20, %c0_21] : memref<8x2xf32, #tpu.memory_space<vmem>>, vector<8x2xf32>
    tpu.vector_store %arg14[%c0_20, %c0_21], %35 {strides = array<i32>} : memref<8x2xf32, #tpu.memory_space<vmem>>, vector<8x2xf32>,
    %c0_22 = arith.constant 0 : index
    %c0_23 = arith.constant 0 : index
    %37 = vector.load %arg6[%c0_22, %c0_23] : memref<1x256xf32, #tpu.memory_space<vmem>>, vector<1x256xf32>
    %c0_24 = arith.constant 0 : index
    %c0_25 = arith.constant 0 : index
    %38 = vector.load %arg7[%c0_24, %c0_25] : memref<1x256xf32, #tpu.memory_space<vmem>>, vector<1x256xf32>
    %cst_26 = arith.constant dense<0.000000e+00> : vector<8xf32>
    %39 = vector.multi_reduction <add>, %5, %cst_26 [1] : vector<8x256xf32> to vector<8xf32>
    %40 = vector.shape_cast %39 : vector<8xf32> to vector<8x1xf32>
    %cst_27 = arith.constant 2.560000e+02 : f32
    %41 = vector.broadcast %cst_27 : f32 to vector<8x1xf32>
    %42 = arith.divf %40, %41 : vector<8x1xf32>
    %43 = vector.broadcast %42 : vector<8x1xf32> to vector<8x256xf32>
    %44 = arith.subf %5, %43 : vector<8x256xf32>
    %45 = arith.mulf %44, %44 : vector<8x256xf32>
    %cst_28 = arith.constant dense<0.000000e+00> : vector<8xf32>
    %46 = vector.multi_reduction <add>, %45, %cst_28 [1] : vector<8x256xf32> to vector<8xf32>
    %47 = vector.shape_cast %46 : vector<8xf32> to vector<8x1xf32>
    %cst_29 = arith.constant 2.560000e+02 : f32
    %48 = vector.broadcast %cst_29 : f32 to vector<8x1xf32>
    %49 = arith.divf %47, %48 : vector<8x1xf32>
    %50 = vector.broadcast %42 : vector<8x1xf32> to vector<8x256xf32>
    %51 = arith.subf %5, %50 : vector<8x256xf32>
    %cst_30 = arith.constant 9.99999974E-6 : f32
    %52 = vector.broadcast %cst_30 : f32 to vector<8x1xf32>
    %53 = arith.addf %49, %52 : vector<8x1xf32>
    %54 = math.rsqrt %53 : vector<8x1xf32>
    %55 = vector.broadcast %54 : vector<8x1xf32> to vector<8x256xf32>
    %56 = arith.mulf %51, %55 : vector<8x256xf32>
    %57 = vector.broadcast %37 : vector<1x256xf32> to vector<8x256xf32>
    %58 = arith.mulf %56, %57 : vector<8x256xf32>
    %59 = vector.broadcast %38 : vector<1x256xf32> to vector<8x256xf32>
    %60 = arith.addf %58, %59 : vector<8x256xf32>
    %c0_31 = arith.constant 0 : index
    %c0_32 = arith.constant 0 : index
    %61 = vector.load %arg8[%c0_31, %c0_32] : memref<256x512xf32, #tpu.memory_space<vmem>>, vector<256x512xf32>
    %cst_33 = arith.constant dense<0.000000e+00> : vector<8x512xf32>
    %62 = tpu.matmul %60, %61, %cst_33 {dimension_numbers = #tpu.dot_dimension_numbers<[1], [0], [0], [1], [0, 0, 1, 1], [], []>} : vector<8x256xf32>, vector<256x512xf32>, vector<8x512xf32> -> vector<8x512xf32>
    %c0_34 = arith.constant 0 : index
    %c0_35 = arith.constant 0 : index
    %63 = vector.load %arg9[%c0_34, %c0_35] : memref<1x512xf32, #tpu.memory_space<vmem>>, vector<1x512xf32>
    %64 = vector.broadcast %63 : vector<1x512xf32> to vector<8x512xf32>
    %65 = arith.addf %62, %64 : vector<8x512xf32>
    %cst_36 = arith.constant 0.000000e+00 : f32
    %66 = vector.broadcast %cst_36 : f32 to vector<8x512xf32>
    %67 = arith.maximumf %65, %66 : vector<8x512xf32>
    %c0_37 = arith.constant 0 : index
    %c0_38 = arith.constant 0 : index
    %68 = vector.load %arg10[%c0_37, %c0_38] : memref<512x256xf32, #tpu.memory_space<vmem>>, vector<512x256xf32>
    %cst_39 = arith.constant dense<0.000000e+00> : vector<8x256xf32>
    %69 = tpu.matmul %67, %68, %cst_39 {dimension_numbers = #tpu.dot_dimension_numbers<[1], [0], [0], [1], [0, 0, 1, 1], [], []>} : vector<8x512xf32>, vector<512x256xf32>, vector<8x256xf32> -> vector<8x256xf32>
    %c0_40 = arith.constant 0 : index
    %c0_41 = arith.constant 0 : index
    %70 = vector.load %arg11[%c0_40, %c0_41] : memref<1x256xf32, #tpu.memory_space<vmem>>, vector<1x256xf32>
    %71 = vector.broadcast %70 : vector<1x256xf32> to vector<8x256xf32>
    %72 = arith.addf %69, %71 : vector<8x256xf32>
    %73 = arith.addf %72, %60 : vector<8x256xf32>
    %c0_42 = arith.constant 0 : index
    %c0_43 = arith.constant 0 : index
    %74 = vector.load %arg12[%c0_42, %c0_43] : memref<1x256xf32, #tpu.memory_space<vmem>>, vector<1x256xf32>
    %c0_44 = arith.constant 0 : index
    %c0_45 = arith.constant 0 : index
    %75 = vector.load %arg13[%c0_44, %c0_45] : memref<1x256xf32, #tpu.memory_space<vmem>>, vector<1x256xf32>
    %cst_46 = arith.constant dense<0.000000e+00> : vector<8xf32>
    %76 = vector.multi_reduction <add>, %73, %cst_46 [1] : vector<8x256xf32> to vector<8xf32>
    %77 = vector.shape_cast %76 : vector<8xf32> to vector<8x1xf32>
    %cst_47 = arith.constant 2.560000e+02 : f32
    %78 = vector.broadcast %cst_47 : f32 to vector<8x1xf32>
    %79 = arith.divf %77, %78 : vector<8x1xf32>
    %80 = vector.broadcast %79 : vector<8x1xf32> to vector<8x256xf32>
    %81 = arith.subf %73, %80 : vector<8x256xf32>
    %82 = arith.mulf %81, %81 : vector<8x256xf32>
    %cst_48 = arith.constant dense<0.000000e+00> : vector<8xf32>
    %83 = vector.multi_reduction <add>, %82, %cst_48 [1] : vector<8x256xf32> to vector<8xf32>
    %84 = vector.shape_cast %83 : vector<8xf32> to vector<8x1xf32>
    %cst_49 = arith.constant 2.560000e+02 : f32
    %85 = vector.broadcast %cst_49 : f32 to vector<8x1xf32>
    %86 = arith.divf %84, %85 : vector<8x1xf32>
    %87 = vector.broadcast %79 : vector<8x1xf32> to vector<8x256xf32>
    %88 = arith.subf %73, %87 : vector<8x256xf32>
    %cst_50 = arith.constant 9.99999974E-6 : f32
    %89 = vector.broadcast %cst_50 : f32 to vector<8x1xf32>
    %90 = arith.addf %86, %89 : vector<8x1xf32>
    %91 = math.rsqrt %90 : vector<8x1xf32>
    %92 = vector.broadcast %91 : vector<8x1xf32> to vector<8x256xf32>
    %93 = arith.mulf %88, %92 : vector<8x256xf32>
    %94 = vector.broadcast %74 : vector<1x256xf32> to vector<8x256xf32>
    %95 = arith.mulf %93, %94 : vector<8x256xf32>
    %96 = vector.broadcast %75 : vector<1x256xf32> to vector<8x256xf32>
    %97 = arith.addf %95, %96 : vector<8x256xf32>
    %98 = arith.mulf %97, %97 : vector<8x256xf32>
    %cst_51 = arith.constant dense<0.000000e+00> : vector<8xf32>
    %99 = vector.multi_reduction <add>, %98, %cst_51 [1] : vector<8x256xf32> to vector<8xf32>
    %100 = vector.shape_cast %99 : vector<8xf32> to vector<8x1xf32>
    %cst_52 = arith.constant 1.000000e-24 : f32
    %101 = vector.broadcast %cst_52 : f32 to vector<8x1xf32>
    %102 = arith.maximumf %100, %101 : vector<8x1xf32>
    %103 = math.rsqrt %102 : vector<8x1xf32>
    %104 = vector.broadcast %103 : vector<8x1xf32> to vector<8x256xf32>
    %105 = arith.mulf %97, %104 : vector<8x256xf32>
    %c0_53 = arith.constant 0 : index
    %c0_54 = arith.constant 0 : index
    %106 = vector.load %arg16[%c0_53, %c0_54] : memref<8x256xf32, #tpu.memory_space<vmem>>, vector<8x256xf32>
    tpu.vector_store %arg16[%c0_53, %c0_54], %105 {strides = array<i32>} : memref<8x256xf32, #tpu.memory_space<vmem>>, vector<8x256xf32>,
    return
  }
}

</mosaic_0001>

<bundles_post_ra>
// kernel: geoloc_forward.1
= control target key start
LH: loop header
LB: loop body
LE: loop exit
PB: predicated region body
PF: predicated region fallthrough
CT: control target
= control target key end

     0   :  { %s2891_s0 = inlined_call_operand.vmem [shape: f32[8,1024], index: 0, kind: input, shape index: {}]   ;;  %s2892_s1 = inlined_call_operand.hbm [shape: f32[1024,256], index: 1, kind: input, shape index: {}]   ;;  %s2893_s2 = inlined_call_operand.vmem [shape: f32[1,256], index: 2, kind: input, shape index: {}]   ;;  %s2894_s3 = inlined_call_operand.vmem [shape: f32[256,128], index: 3, kind: input, shape index: {}]   ;;  %s2895_s4 = inlined_call_operand.vmem [shape: f32[1,128], index: 4, kind: input, shape index: {}]   ;;  %s2896_s5 = inlined_call_operand.vmem [shape: f32[128,2], index: 5, kind: input, shape index: {}]   ;;  %s2897_s6 = inlined_call_operand.vmem [shape: f32[1,256], index: 6, kind: input, shape index: {}]   ;;  %s2898_s7 = inlined_call_operand.vmem [shape: f32[1,256], index: 7, kind: input, shape index: {}]   ;;  %s2899_s8 = inlined_call_operand.hbm [shape: f32[256,512], index: 8, kind: input, shape index: {}]   ;;  %s2900_s9 = inlined_call_operand.vmem [shape: f32[1,512], index: 9, kind: input, shape index: {}]   ;;  %s2901_s10 = inlined_call_operand.hbm [shape: f32[512,256], index: 10, kind: input, shape index: {}]   ;;  %s2902_s11 = inlined_call_operand.vmem [shape: f32[1,256], index: 11, kind: input, shape index: {}]   ;;  %s2903_s12 = inlined_call_operand.vmem [shape: f32[1,256], index: 12, kind: input, shape index: {}]   ;;  %s2904_s13 = inlined_call_operand.vmem [shape: f32[1,256], index: 13, kind: input, shape index: {}]   ;;  %s2905_s14 = inlined_call_operand.vmem [shape: f32[8,2], index: 14, kind: output, shape index: {0}]   ;;  %s2906_s15 = inlined_call_operand.hbm [shape: f32[8,128], index: 15, kind: output, shape index: {1}]   ;;  %s2907_s16 = inlined_call_operand.hbm [shape: f32[8,256], index: 16, kind: output, shape index: {2}]   ;;  %s2908_s17 = inlined_call_operand.hbm [shape: f32[8,256], index: 17, kind: output, shape index: {3}]  }
   0x1   :  { %2912 = sst [smem:[#allocation16_spill]] %s2891_s0 }
   0x2   :  { %2913 = sst [smem:[#allocation17_spill]] %s2892_s1 }
   0x3   :  { %2914 = sst [smem:[#allocation18_spill]] %s2908_s17 }
   0x4   :  { %23 = vsyncpa [#allocation3], 0 }
   0x5   :  { %24 = vsyncpa [#allocation6], 0 }
   0x6   :  { %25 = vsyncpa [#allocation4], 0 }
   0x7   :  { %26 = vsyncpa [#allocation10], 0  ;;  %s2445_s24 = smov [#allocation5]   ;;  %s2305_s28 = scalar_lea.hbm %s2899_s8, 16384 }
   0x8   :  { %s58_s25 = sshll.u32 %s2445_s24, 4  ;;  %p2306_p0 = scmp.ne.s32.totalorder %s2899_s8, %s2305_s28  ;;  %s59_s25 = int_to_ptr.vmem [resolvable:$true] %s58_s25 }
   0x9   :  { %p2309_p1 = scmp.lt.u32.totalorder %s2305_s28, %s2899_s8 }
   0xb   :  { %p2311_p2 = pnand %p2309_p1, %p2306_p0 }
   0xd   :  { %2314 = shalt.err (!%p2311_p2)
}
   0xe   :  { %s2315_s19 = scalar_lea.vmem %s59_s25, 16384  ;;  %p2320_p4 = scmp.lt.s32.totalorder %s59_s25, %s59_s25 }
   0xf   :  { %p2316_p3 = scmp.ne.s32.totalorder %s59_s25, %s2315_s19  ;;  %p2321_p5 = scmp.lt.s32.totalorder %s2315_s19, %s2315_s19 }
  0x11   :  { %p2322_p6 = por %p2321_p5, %p2320_p4 }
  0x13   :  { %p2323_p7 = pnand %p2322_p6, %p2316_p3 }
  0x15   :  { %2326 = shalt.err (!%p2323_p7)
}
  0x16   :  { %s2446_s1 = smov 512   ;;  %s2447_s20 = smov 32  }
  0x17   :  { %64 = dma.hbm_to_vmem [thread:$0]  %s2899_s8, 16384, %s59_s25, [#allocation6], %s2446_s1, %s2446_s1, %s2447_s20  }
  0x18   :  { %s2448_s23 = smov [#allocation2]   ;;  %s2915_s28 = sld [smem:[#allocation17_spill]] }
  0x19   :  { %s34_s24 = sshll.u32 %s2448_s23, 4  ;;  %s35_s24 = int_to_ptr.vmem [resolvable:$true] %s34_s24 }
  0x1e   :  { %s2327_s29 = scalar_lea.hbm %s2915_s28, 32768 }
  0x1f   :  { %p2328_p8 = scmp.ne.s32.totalorder %s2915_s28, %s2327_s29  ;;  %p2331_p9 = scmp.lt.u32.totalorder %s2327_s29, %s2915_s28 }
  0x21   :  { %p2333_p10 = pnand %p2331_p9, %p2328_p8 }
  0x23   :  { %2336 = shalt.err (!%p2333_p10)
}
  0x24   :  { %s2337_s17 = scalar_lea.vmem %s35_s24, 32768  ;;  %p2342_p12 = scmp.lt.s32.totalorder %s35_s24, %s35_s24 }
  0x25   :  { %p2338_p11 = scmp.ne.s32.totalorder %s35_s24, %s2337_s17  ;;  %p2343_p13 = scmp.lt.s32.totalorder %s2337_s17, %s2337_s17 }
  0x27   :  { %p2344_p0 = por %p2343_p13, %p2342_p12 }
  0x29   :  { %p2345_p1 = pnand %p2344_p0, %p2338_p11 }
  0x2b   :  { %2348 = shalt.err (!%p2345_p1)
}
  0x2c   :  { %s2449_s8 = smov 256   ;;  %s2450_s25 = smov 16  }
  0x2d   :  { %40 = dma.hbm_to_vmem [thread:$0]  %s2915_s28, 32768, %s35_s24, [#allocation3], %s2449_s8, %s2449_s8, %s2450_s25  }
  0x2e   :  { %s2451_s21 = smov [#allocation7]   ;;  %s2349_s27 = scalar_lea.hbm %s2901_s10, 16384 }
  0x2f   :  { %s72_s22 = sshll.u32 %s2451_s21, 4  ;;  %p2350_p2 = scmp.ne.s32.totalorder %s2901_s10, %s2349_s27  ;;  %s73_s22 = int_to_ptr.vmem [resolvable:$true] %s72_s22 }
  0x30   :  { %p2353_p3 = scmp.lt.u32.totalorder %s2349_s27, %s2901_s10 }
  0x32   :  { %p2355_p4 = pnand %p2353_p3, %p2350_p2 }
  0x34   :  { %2358 = shalt.err (!%p2355_p4)
}
  0x35   :  { %s2359_s18 = scalar_lea.vmem %s73_s22, 16384  ;;  %p2364_p6 = scmp.lt.s32.totalorder %s73_s22, %s73_s22 }
  0x36   :  { %p2360_p5 = scmp.ne.s32.totalorder %s73_s22, %s2359_s18  ;;  %p2365_p7 = scmp.lt.s32.totalorder %s2359_s18, %s2359_s18 }
  0x38   :  { %p2366_p8 = por %p2365_p7, %p2364_p6 }
  0x3a   :  { %p2367_p9 = pnand %p2366_p8, %p2360_p5 }
  0x3c   :  { %2370 = shalt.err (!%p2367_p9)
}
  0x3d   :  { %78 = dma.hbm_to_vmem [thread:$0]  %s2901_s10, 16384, %s73_s22, [#allocation6], %s2449_s8, %s2449_s8, %s2450_s25  }
  0x3e   :  { %2437 = dma.done.wait [#allocation3], 32768  }
  0x3f   :  { %2438 = vsyncadd [#allocation3], 4294934528 }
  0x40   :  { %2439 = dma.done.wait [#allocation6], 32768  }
  0x41   :  { %2440 = vsyncadd [#allocation6], 4294934528  ;;  %v103_v0 = vld [vmem:[#allocation2 + $0x8] sm:$0xff]  ;;  %v105_v1 = vld [vmem:[#allocation2 + $0x18] sm:$0xff]  ;;  %s2916_s8 = sld [smem:[#allocation16_spill]]  ;;  %vm2453_vm2 = vmmov 0  }
  0x42   :  { %v102_v2 = vld [vmem:[#allocation2] sm:$0xff]  ;;  %v1701_v3 = vpack.c.bf16 %v105_v1, %v103_v0  ;;  %v104_v4 = vld [vmem:[#allocation2 + $0x10] sm:$0xff]  ;;  %v107_v5 = vld [vmem:[#allocation2 + $0x28] sm:$0xff]  ;;  %vm882_vm4 = vcmask 15360  }
  0x43   :  { %v109_v6 = vld [vmem:[#allocation2 + $0x38] sm:$0xff]  ;;  %v1703_v7 = vpack.c.bf16 %v104_v4, %v102_v2  ;;  %v106_v9 = vld [vmem:[#allocation2 + $0x20] sm:$0xff]  ;;  %v108_v10 = vld [vmem:[#allocation2 + $0x30] sm:$0xff] }
  0x44   :  { %v1705_v8 = vpack.c.bf16 %v109_v6, %v107_v5  ;;  %v111_v11 = vld [vmem:[#allocation2 + $0x48] sm:$0xff]  ;;  %1702 = vmatprep.subr.bf16.mxu0 %v1701_v3  ;;  %v113_v12 = vld [vmem:[#allocation2 + $0x58] sm:$0xff]  ;;  %v1707_v13 = vpack.c.bf16 %v108_v10, %v106_v9  ;;  %v110_v15 = vld [vmem:[#allocation2 + $0x40] sm:$0xff] }
  0x45   :  { %1704 = vmatpush1.bf16.msra.mxu0 %v1703_v7  ;;  %v1709_v14 = vpack.c.bf16 %v113_v12, %v111_v11  ;;  %v112_v16 = vld [vmem:[#allocation2 + $0x50] sm:$0xff]  ;;  %v115_v17 = vld [vmem:[#allocation2 + $0x68] sm:$0xff]  ;;  %v117_v18 = vld [vmem:[#allocation2 + $0x78] sm:$0xff] }
  0x46   :  { %1706 = vmatprep.subr.bf16.mxu0 %v1705_v8  ;;  %v1711_v19 = vpack.c.bf16 %v112_v16, %v110_v15  ;;  %v1713_v20 = vpack.c.bf16 %v117_v18, %v115_v17  ;;  %v114_v21 = vld [vmem:[#allocation2 + $0x60] sm:$0xff]  ;;  %v116_v22 = vld [vmem:[#allocation2 + $0x70] sm:$0xff]  ;;  %v119_v23 = vld [vmem:[#allocation2 + $0x88] sm:$0xff] }
  0x47   :  { %v121_v24 = vld [vmem:[#allocation2 + $0x98] sm:$0xff]  ;;  %v1715_v25 = vpack.c.bf16 %v116_v22, %v114_v21  ;;  %v118_v27 = vld [vmem:[#allocation2 + $0x80] sm:$0xff]  ;;  %v120_v28 = vld [vmem:[#allocation2 + $0x90] sm:$0xff] }
  0x48   :  { %v1717_v26 = vpack.c.bf16 %v121_v24, %v119_v23  ;;  %v123_v29 = vld [vmem:[#allocation2 + $0xa8] sm:$0xff]  ;;  %v125_v30 = vld [vmem:[#allocation2 + $0xb8] sm:$0xff]  ;;  %v1719_v31 = vpack.c.bf16 %v120_v28, %v118_v27  ;;  %v122_v33 = vld [vmem:[#allocation2 + $0xa0] sm:$0xff] }
  0x49   :  { %1708 = vmatpush1.bf16.msra.mxu0 %v1707_v13  ;;  %v1721_v32 = vpack.c.bf16 %v125_v30, %v123_v29  ;;  %v124_v34 = vld [vmem:[#allocation2 + $0xb0] sm:$0xff]  ;;  %v127_v35 = vld [vmem:[#allocation2 + $0xc8] sm:$0xff]  ;;  %v129_v36 = vld [vmem:[#allocation2 + $0xd8] sm:$0xff] }
  0x4a   :  { %1710 = vmatprep.subr.bf16.mxu0 %v1709_v14  ;;  %v1723_v37 = vpack.c.bf16 %v124_v34, %v122_v33  ;;  %v1725_v38 = vpack.c.bf16 %v129_v36, %v127_v35  ;;  %v126_v39 = vld [vmem:[#allocation2 + $0xc0] sm:$0xff]  ;;  %v128_v40 = vld [vmem:[#allocation2 + $0xd0] sm:$0xff]  ;;  %v95_v41 = vld [vmem:[%s2916_s8 + $0x8] sm:$0xff] }
  0x4b   :  { %v131_v42 = vld [vmem:[#allocation2 + $0xe8] sm:$0xff]  ;;  %v133_v43 = vld [vmem:[#allocation2 + $0xf8] sm:$0xff]  ;;  %434 = vmatprep.mubr.f32.mxu0 %v95_v41  ;;  %v1727_v44 = vpack.c.bf16 %v128_v40, %v126_v39  ;;  %v130_v46 = vld [vmem:[#allocation2 + $0xe0] sm:$0xff] }
  0x4c   :  { %v1729_v45 = vpack.c.bf16 %v133_v43, %v131_v42  ;;  %v132_v47 = vld [vmem:[#allocation2 + $0xf0] sm:$0xff]  ;;  %v135_v48 = vld [vmem:[#allocation2 + $0x108] sm:$0xff]  ;;  %v137_v49 = vld [vmem:[#allocation2 + $0x118] sm:$0xff] }
  0x4d   :  { %1712 = vmatpush1.bf16.msra.mxu0 %v1711_v19  ;;  %v1731_v50 = vpack.c.bf16 %v132_v47, %v130_v46  ;;  %v1733_v51 = vpack.c.bf16 %v137_v49, %v135_v48  ;;  %v134_v52 = vld [vmem:[#allocation2 + $0x100] sm:$0xff]  ;;  %v136_v53 = vld [vmem:[#allocation2 + $0x110] sm:$0xff]  ;;  %v139_v54 = vld [vmem:[#allocation2 + $0x128] sm:$0xff] }
  0x4e   :  { %1714 = vmatprep.subr.bf16.mxu0 %v1713_v20  ;;  %v141_v55 = vld [vmem:[#allocation2 + $0x138] sm:$0xff]  ;;  %v1735_v56 = vpack.c.bf16 %v136_v53, %v134_v52  ;;  %v138_v58 = vld [vmem:[#allocation2 + $0x120] sm:$0xff]  ;;  %v140_v59 = vld [vmem:[#allocation2 + $0x130] sm:$0xff] }
  0x4f   :  { %v1737_v57 = vpack.c.bf16 %v141_v55, %v139_v54  ;;  %v143_v60 = vld [vmem:[#allocation2 + $0x148] sm:$0xff]  ;;  %v145_v61 = vld [vmem:[#allocation2 + $0x158] sm:$0xff]  ;;  %v1739_v62 = vpack.c.bf16 %v140_v59, %v138_v58  ;;  %v142_v0 = vld [vmem:[#allocation2 + $0x140] sm:$0xff] }
  0x50   :  { %v1741_v63 = vpack.c.bf16 %v145_v61, %v143_v60  ;;  %v144_v1 = vld [vmem:[#allocation2 + $0x150] sm:$0xff]  ;;  %v147_v2 = vld [vmem:[#allocation2 + $0x168] sm:$0xff]  ;;  %v149_v3 = vld [vmem:[#allocation2 + $0x178] sm:$0xff] }
  0x51   :  { %1716 = vmatpush1.bf16.msra.mxu0 %v1715_v25  ;;  %v1743_v4 = vpack.c.bf16 %v144_v1, %v142_v0  ;;  %v1745_v5 = vpack.c.bf16 %v149_v3, %v147_v2  ;;  %v146_v6 = vld [vmem:[#allocation2 + $0x160] sm:$0xff]  ;;  %v148_v7 = vld [vmem:[#allocation2 + $0x170] sm:$0xff]  ;;  %v151_v8 = vld [vmem:[#allocation2 + $0x188] sm:$0xff] }
  0x52   :  { %1718 = vmatprep.subr.bf16.mxu0 %v1717_v26  ;;  %v153_v9 = vld [vmem:[#allocation2 + $0x198] sm:$0xff]  ;;  %v1747_v10 = vpack.c.bf16 %v148_v7, %v146_v6  ;;  %v150_v12 = vld [vmem:[#allocation2 + $0x180] sm:$0xff]  ;;  %v152_v13 = vld [vmem:[#allocation2 + $0x190] sm:$0xff] }
  0x53   :  { %v1749_v11 = vpack.c.bf16 %v153_v9, %v151_v8  ;;  %v155_v14 = vld [vmem:[#allocation2 + $0x1a8] sm:$0xff]  ;;  %v157_v15 = vld [vmem:[#allocation2 + $0x1b8] sm:$0xff]  ;;  %v1751_v16 = vpack.c.bf16 %v152_v13, %v150_v12  ;;  %v154_v18 = vld [vmem:[#allocation2 + $0x1a0] sm:$0xff] }
  0x54   :  { %v1753_v17 = vpack.c.bf16 %v157_v15, %v155_v14  ;;  %v156_v19 = vld [vmem:[#allocation2 + $0x1b0] sm:$0xff]  ;;  %v159_v20 = vld [vmem:[#allocation2 + $0x1c8] sm:$0xff]  ;;  %v161_v21 = vld [vmem:[#allocation2 + $0x1d8] sm:$0xff] }
  0x55   :  { %1720 = vmatpush1.bf16.msra.mxu0 %v1719_v31  ;;  %v1755_v22 = vpack.c.bf16 %v156_v19, %v154_v18  ;;  %v1757_v23 = vpack.c.bf16 %v161_v21, %v159_v20  ;;  %v158_v24 = vld [vmem:[#allocation2 + $0x1c0] sm:$0xff]  ;;  %v160_v25 = vld [vmem:[#allocation2 + $0x1d0] sm:$0xff]  ;;  %v163_v26 = vld [vmem:[#allocation2 + $0x1e8] sm:$0xff] }
  0x56   :  { %1722 = vmatprep.subr.bf16.mxu0 %v1721_v32  ;;  %v165_v27 = vld [vmem:[#allocation2 + $0x1f8] sm:$0xff]  ;;  %v1759_v28 = vpack.c.bf16 %v160_v25, %v158_v24  ;;  %v162_v30 = vld [vmem:[#allocation2 + $0x1e0] sm:$0xff]  ;;  %v164_v31 = vld [vmem:[#allocation2 + $0x1f0] sm:$0xff] }
  0x57   :  { %v1761_v29 = vpack.c.bf16 %v165_v27, %v163_v26  ;;  %v167_v32 = vld [vmem:[#allocation2 + $0x208] sm:$0xff]  ;;  %v169_v33 = vld [vmem:[#allocation2 + $0x218] sm:$0xff]  ;;  %v1763_v34 = vpack.c.bf16 %v164_v31, %v162_v30  ;;  %v166_v36 = vld [vmem:[#allocation2 + $0x200] sm:$0xff] }
  0x58   :  { %v1765_v35 = vpack.c.bf16 %v169_v33, %v167_v32  ;;  %v173_v39 = vld [vmem:[#allocation2 + $0x238] sm:$0xff]  ;;  %v94_v40 = vld [vmem:[%s2916_s8] sm:$0xff]  ;;  %v175_v46 = vld [vmem:[#allocation2 + $0x248] sm:$0xff] }
  0x59   :  { %1724 = vmatpush1.bf16.msra.mxu0 %v1723_v37  ;;  %v168_v37 = vld [vmem:[#allocation2 + $0x210] sm:$0xff]  ;;  %v170_v43 = vld [vmem:[#allocation2 + $0x220] sm:$0xff]  ;;  %v177_v47 = vld [vmem:[#allocation2 + $0x258] sm:$0xff] }
  0x5a   :  { %1726 = vmatprep.subr.bf16.mxu0 %v1725_v38  ;;  %v171_v38 = vld [vmem:[#allocation2 + $0x228] sm:$0xff]  ;;  %v1767_v41 = vpack.c.bf16 %v168_v37, %v166_v36  ;;  %v1773_v49 = vpack.c.bf16 %v177_v47, %v175_v46  ;;  %v181_v53 = vld [vmem:[#allocation2 + $0x278] sm:$0xff]  ;;  %v214_v46 = vld [vmem:[#allocation2 + $0x380] sm:$0xff] }
  0x5b   :  { %v1769_v42 = vpack.c.bf16 %v173_v39, %v171_v38  ;;  %v179_v52 = vld [vmem:[#allocation2 + $0x268] sm:$0xff]  ;;  %v185_v59 = vld [vmem:[#allocation2 + $0x298] sm:$0xff]  ;;  %v216_v47 = vld [vmem:[#allocation2 + $0x390] sm:$0xff] }
  0x5c   :  { %v1777_v55 = vpack.c.bf16 %v181_v53, %v179_v52  ;;  %v183_v58 = vld [vmem:[#allocation2 + $0x288] sm:$0xff]  ;;  %v189_v1 = vld [vmem:[#allocation2 + $0x2b8] sm:$0xff]  ;;  %v218_v52 = vld [vmem:[#allocation2 + $0x3a0] sm:$0xff] }
  0x5d   :  { %1728 = vmatpush1.bf16.msra.mxu0 %v1727_v44  ;;  %v172_v44 = vld [vmem:[#allocation2 + $0x230] sm:$0xff]  ;;  %v1781_v61 = vpack.c.bf16 %v185_v59, %v183_v58  ;;  %v187_v0 = vld [vmem:[#allocation2 + $0x2a8] sm:$0xff]  ;;  %v193_v7 = vld [vmem:[#allocation2 + $0x2d8] sm:$0xff] }
  0x5e   :  { %1730 = vmatprep.subr.bf16.mxu0 %v1729_v45  ;;  %v97_v45 = vld [vmem:[%s2916_s8 + $0x18] sm:$0xff]  ;;  %v1771_v48 = vpack.c.bf16 %v172_v44, %v170_v43  ;;  %v1785_v3 = vpack.c.bf16 %v189_v1, %v187_v0  ;;  %v191_v6 = vld [vmem:[#allocation2 + $0x2c8] sm:$0xff]  ;;  %v220_v53 = vld [vmem:[#allocation2 + $0x3b0] sm:$0xff] }
  0x5f   :  { %v1789_v9 = vpack.c.bf16 %v193_v7, %v191_v6  ;;  %v195_v12 = vld [vmem:[#allocation2 + $0x2e8] sm:$0xff]  ;;  %v197_v13 = vld [vmem:[#allocation2 + $0x2f8] sm:$0xff]  ;;  %v222_v58 = vld [vmem:[#allocation2 + $0x3c0] sm:$0xff] }
  0x60   :  { %v1793_v15 = vpack.c.bf16 %v197_v13, %v195_v12  ;;  %v199_v18 = vld [vmem:[#allocation2 + $0x308] sm:$0xff]  ;;  %v201_v19 = vld [vmem:[#allocation2 + $0x318] sm:$0xff]  ;;  %v224_v59 = vld [vmem:[#allocation2 + $0x3d0] sm:$0xff] }
  0x61   :  { %1732 = vmatpush1.bf16.msra.mxu0 %v1731_v50  ;;  %v174_v50 = vld [vmem:[#allocation2 + $0x240] sm:$0xff]  ;;  %v1797_v21 = vpack.c.bf16 %v201_v19, %v199_v18  ;;  %v203_v24 = vld [vmem:[#allocation2 + $0x328] sm:$0xff]  ;;  %v205_v25 = vld [vmem:[#allocation2 + $0x338] sm:$0xff] }
  0x62   :  { %1734 = vmatprep.subr.bf16.mxu0 %v1733_v51  ;;  %v176_v51 = vld [vmem:[#allocation2 + $0x250] sm:$0xff]  ;;  %v1801_v27 = vpack.c.bf16 %v205_v25, %v203_v24  ;;  %v207_v30 = vld [vmem:[#allocation2 + $0x348] sm:$0xff]  ;;  %v209_v31 = vld [vmem:[#allocation2 + $0x358] sm:$0xff] }
  0x63   :  { %v1775_v54 = vpack.c.bf16 %v176_v51, %v174_v50  ;;  %v1805_v33 = vpack.c.bf16 %v209_v31, %v207_v30  ;;  %v211_v36 = vld [vmem:[#allocation2 + $0x368] sm:$0xff]  ;;  %v213_v37 = vld [vmem:[#allocation2 + $0x378] sm:$0xff]  ;;  %v1815_v50 = vpack.c.bf16 %v216_v47, %v214_v46  ;;  %v226_v0 = vld [vmem:[#allocation2 + $0x3e0] sm:$0xff] }
  0x64   :  { %v1809_v39 = vpack.c.bf16 %v213_v37, %v211_v36  ;;  %v217_v43 = vld [vmem:[#allocation2 + $0x398] sm:$0xff]  ;;  %v228_v1 = vld [vmem:[#allocation2 + $0x3f0] sm:$0xff]  ;;  %v230_v6 = vld [vmem:[#allocation2 + $0x400] sm:$0xff] }
  0x65   :  { %1736 = vmatpush1.bf16.msra.mxu0 %v1735_v56  ;;  %v178_v56 = vld [vmem:[#allocation2 + $0x260] sm:$0xff]  ;;  %v232_v7 = vld [vmem:[#allocation2 + $0x410] sm:$0xff]  ;;  %v259_v46 = vld [vmem:[#allocation2 + $0x4e8] sm:$0xff] }
  0x66   :  { %1738 = vmatprep.subr.bf16.mxu0 %v1737_v57  ;;  %v180_v57 = vld [vmem:[#allocation2 + $0x270] sm:$0xff]  ;;  %v234_v13 = vld [vmem:[#allocation2 + $0x420] sm:$0xff]  ;;  %v261_v47 = vld [vmem:[#allocation2 + $0x4f8] sm:$0xff] }
  0x67   :  { %v1779_v60 = vpack.c.bf16 %v180_v57, %v178_v56  ;;  %v1819_v56 = vpack.c.bf16 %v220_v53, %v218_v52  ;;  %v263_v52 = vld [vmem:[#allocation2 + $0x508] sm:$0xff]  ;;  %v265_v53 = vld [vmem:[#allocation2 + $0x518] sm:$0xff] }
  0x69   :  { %1740 = vmatpush1.bf16.msra.mxu0 %v1739_v62  ;;  %v182_v62 = vld [vmem:[#allocation2 + $0x280] sm:$0xff] }
  0x6a   :  { %1742 = vmatprep.subr.bf16.mxu0 %v1741_v63  ;;  %v184_v63 = vld [vmem:[#allocation2 + $0x290] sm:$0xff] }
  0x6b   :  { %v1783_v2 = vpack.c.bf16 %v184_v63, %v182_v62  ;;  %v1823_v62 = vpack.c.bf16 %v224_v59, %v222_v58  ;;  %v267_v58 = vld [vmem:[#allocation2 + $0x528] sm:$0xff]  ;;  %v269_v59 = vld [vmem:[#allocation2 + $0x538] sm:$0xff] }
  0x6d   :  { %1744 = vmatpush1.bf16.msra.mxu0 %v1743_v4  ;;  %v186_v4 = vld [vmem:[#allocation2 + $0x2a0] sm:$0xff] }
  0x6e   :  { %1746 = vmatprep.subr.bf16.mxu0 %v1745_v5  ;;  %v188_v5 = vld [vmem:[#allocation2 + $0x2b0] sm:$0xff] }
  0x6f   :  { %v1787_v8 = vpack.c.bf16 %v188_v5, %v186_v4  ;;  %v1827_v4 = vpack.c.bf16 %v228_v1, %v226_v0  ;;  %v271_v0 = vld [vmem:[#allocation2 + $0x548] sm:$0xff]  ;;  %v273_v1 = vld [vmem:[#allocation2 + $0x558] sm:$0xff] }
  0x71   :  { %1748 = vmatpush1.bf16.msra.mxu0 %v1747_v10  ;;  %v190_v10 = vld [vmem:[#allocation2 + $0x2c0] sm:$0xff] }
  0x72   :  { %1750 = vmatprep.subr.bf16.mxu0 %v1749_v11  ;;  %v192_v11 = vld [vmem:[#allocation2 + $0x2d0] sm:$0xff] }
  0x73   :  { %v1791_v14 = vpack.c.bf16 %v192_v11, %v190_v10  ;;  %v96_v10 = vld [vmem:[%s2916_s8 + $0x10] sm:$0xff]  ;;  %v1831_v11 = vpack.c.bf16 %v232_v7, %v230_v6  ;;  %v275_v6 = vld [vmem:[#allocation2 + $0x568] sm:$0xff]  ;;  %v277_v7 = vld [vmem:[#allocation2 + $0x578] sm:$0xff] }
  0x75   :  { %1752 = vmatpush1.bf16.msra.mxu0 %v1751_v16  ;;  %v194_v16 = vld [vmem:[#allocation2 + $0x2e0] sm:$0xff] }
  0x76   :  { %1754 = vmatprep.subr.bf16.mxu0 %v1753_v17  ;;  %v196_v17 = vld [vmem:[#allocation2 + $0x2f0] sm:$0xff] }
  0x77   :  { %v1795_v20 = vpack.c.bf16 %v196_v17, %v194_v16  ;;  %v239_v16 = vld [vmem:[#allocation2 + $0x448] sm:$0xff]  ;;  %v241_v17 = vld [vmem:[#allocation2 + $0x458] sm:$0xff] }
  0x78   :  { %v1837_v19 = vpack.c.bf16 %v241_v17, %v239_v16  ;;  %v278_v16 = vld [vmem:[#allocation2 + $0x580] sm:$0xff]  ;;  %v280_v17 = vld [vmem:[#allocation2 + $0x590] sm:$0xff] }
  0x79   :  { %1756 = vmatpush1.bf16.msra.mxu0 %v1755_v22  ;;  %v198_v22 = vld [vmem:[#allocation2 + $0x300] sm:$0xff] }
  0x7a   :  { %1758 = vmatprep.subr.bf16.mxu0 %v1757_v23  ;;  %v200_v23 = vld [vmem:[#allocation2 + $0x310] sm:$0xff] }
  0x7b   :  { %v1799_v26 = vpack.c.bf16 %v200_v23, %v198_v22  ;;  %v243_v22 = vld [vmem:[#allocation2 + $0x468] sm:$0xff]  ;;  %v245_v23 = vld [vmem:[#allocation2 + $0x478] sm:$0xff] }
  0x7c   :  { %v1841_v25 = vpack.c.bf16 %v245_v23, %v243_v22  ;;  %v282_v22 = vld [vmem:[#allocation2 + $0x5a0] sm:$0xff]  ;;  %v284_v23 = vld [vmem:[#allocation2 + $0x5b0] sm:$0xff] }
  0x7d   :  { %1760 = vmatpush1.bf16.msra.mxu0 %v1759_v28  ;;  %v202_v28 = vld [vmem:[#allocation2 + $0x320] sm:$0xff] }
  0x7e   :  { %1762 = vmatprep.subr.bf16.mxu0 %v1761_v29  ;;  %v204_v29 = vld [vmem:[#allocation2 + $0x330] sm:$0xff] }
  0x7f   :  { %v1803_v32 = vpack.c.bf16 %v204_v29, %v202_v28  ;;  %v247_v28 = vld [vmem:[#allocation2 + $0x488] sm:$0xff]  ;;  %v249_v29 = vld [vmem:[#allocation2 + $0x498] sm:$0xff] }
  0x80   :  { %v1845_v31 = vpack.c.bf16 %v249_v29, %v247_v28  ;;  %v286_v28 = vld [vmem:[#allocation2 + $0x5c0] sm:$0xff]  ;;  %v288_v29 = vld [vmem:[#allocation2 + $0x5d0] sm:$0xff] }
  0x81   :  { %1764 = vmatpush1.bf16.msra.mxu0 %v1763_v34  ;;  %v206_v34 = vld [vmem:[#allocation2 + $0x340] sm:$0xff] }
  0x82   :  { %1766 = vmatprep.subr.bf16.mxu0 %v1765_v35  ;;  %v208_v35 = vld [vmem:[#allocation2 + $0x350] sm:$0xff] }
  0x83   :  { %v1807_v38 = vpack.c.bf16 %v208_v35, %v206_v34  ;;  %v251_v34 = vld [vmem:[#allocation2 + $0x4a8] sm:$0xff]  ;;  %v253_v35 = vld [vmem:[#allocation2 + $0x4b8] sm:$0xff] }
  0x84   :  { %435 = vmatmul.mubr.f32.vlgmr.msra.gmra.mrb[0].mxu0 %v94_v40  ;;  %v210_v40 = vld [vmem:[#allocation2 + $0x360] sm:$0xff]  ;;  %v1849_v37 = vpack.c.bf16 %v253_v35, %v251_v34  ;;  %v292_v35 = vld [vmem:[#allocation2 + $0x5f0] sm:$0xff] }
  0x85   :  { %1768 = vmatpush1.bf16.msra.mxu0 %v1767_v41  ;;  %505 = vmatprep.mubr.f32.mxu0 %v97_v45  ;;  %v212_v41 = vld [vmem:[#allocation2 + $0x370] sm:$0xff]  ;;  %v290_v34 = vld [vmem:[#allocation2 + $0x5e0] sm:$0xff] }
  0x86   :  { %1770 = vmatprep.subr.bf16.mxu0 %v1769_v42  ;;  %v215_v42 = vld [vmem:[#allocation2 + $0x388] sm:$0xff]  ;;  %v1811_v44 = vpack.c.bf16 %v212_v41, %v210_v40  ;;  %v257_v41 = vld [vmem:[#allocation2 + $0x4d8] sm:$0xff] }
  0x87   :  { %v1813_v45 = vpack.c.bf16 %v217_v43, %v215_v42  ;;  %v255_v40 = vld [vmem:[#allocation2 + $0x4c8] sm:$0xff] }
  0x88   :  { %v1853_v43 = vpack.c.bf16 %v257_v41, %v255_v40  ;;  %v294_v40 = vld [vmem:[#allocation2 + $0x600] sm:$0xff]  ;;  %v296_v41 = vld [vmem:[#allocation2 + $0x610] sm:$0xff] }
  0x89   :  { %1772 = vmatpush1.bf16.msra.mxu0 %v1771_v48  ;;  %v219_v48 = vld [vmem:[#allocation2 + $0x3a8] sm:$0xff] }
  0x8a   :  { %1774 = vmatprep.subr.bf16.mxu0 %v1773_v49  ;;  %v221_v49 = vld [vmem:[#allocation2 + $0x3b8] sm:$0xff] }
  0x8b   :  { %v1817_v51 = vpack.c.bf16 %v221_v49, %v219_v48  ;;  %v1857_v49 = vpack.c.bf16 %v261_v47, %v259_v46  ;;  %v298_v47 = vld [vmem:[#allocation2 + $0x620] sm:$0xff] }
  0x8d   :  { %1776 = vmatpush1.bf16.msra.mxu0 %v1775_v54  ;;  %v223_v54 = vld [vmem:[#allocation2 + $0x3c8] sm:$0xff] }
  0x8e   :  { %1778 = vmatprep.subr.bf16.mxu0 %v1777_v55  ;;  %v225_v55 = vld [vmem:[#allocation2 + $0x3d8] sm:$0xff] }
  0x8f   :  { %v1821_v57 = vpack.c.bf16 %v225_v55, %v223_v54  ;;  %v1861_v55 = vpack.c.bf16 %v265_v53, %v263_v52 }
  0x91   :  { %1780 = vmatpush1.bf16.msra.mxu0 %v1779_v60  ;;  %v227_v60 = vld [vmem:[#allocation2 + $0x3e8] sm:$0xff] }
  0x92   :  { %1782 = vmatprep.subr.bf16.mxu0 %v1781_v61  ;;  %v229_v61 = vld [vmem:[#allocation2 + $0x3f8] sm:$0xff] }
  0x93   :  { %v1825_v63 = vpack.c.bf16 %v229_v61, %v227_v60  ;;  %v1865_v61 = vpack.c.bf16 %v269_v59, %v267_v58 }
  0x95   :  { %1784 = vmatpush1.bf16.msra.mxu0 %v1783_v2  ;;  %v231_v2 = vld [vmem:[#allocation2 + $0x408] sm:$0xff] }
  0x96   :  { %1786 = vmatprep.subr.bf16.mxu0 %v1785_v3  ;;  %v233_v3 = vld [vmem:[#allocation2 + $0x418] sm:$0xff] }
  0x97   :  { %v1829_v5 = vpack.c.bf16 %v233_v3, %v231_v2  ;;  %v1869_v3 = vpack.c.bf16 %v273_v1, %v271_v0 }
  0x99   :  { %1788 = vmatpush1.bf16.msra.mxu0 %v1787_v8  ;;  %v235_v8 = vld [vmem:[#allocation2 + $0x428] sm:$0xff] }
  0x9a   :  { %1790 = vmatprep.subr.bf16.mxu0 %v1789_v9  ;;  %v237_v9 = vld [vmem:[#allocation2 + $0x438] sm:$0xff] }
  0x9b   :  { %v1833_v12 = vpack.c.bf16 %v237_v9, %v235_v8  ;;  %v1873_v9 = vpack.c.bf16 %v277_v7, %v275_v6 }
  0x9d   :  { %1792 = vmatpush1.bf16.msra.mxu0 %v1791_v14  ;;  %v236_v14 = vld [vmem:[#allocation2 + $0x430] sm:$0xff] }
  0x9e   :  { %1794 = vmatprep.subr.bf16.mxu0 %v1793_v15  ;;  %v99_v15 = vld [vmem:[%s2916_s8 + $0x28] sm:$0xff]  ;;  %v1835_v18 = vpack.c.bf16 %v236_v14, %v234_v13  ;;  %v281_v13 = vld [vmem:[#allocation2 + $0x598] sm:$0xff] }
  0xa1   :  { %1796 = vmatpush1.bf16.msra.mxu0 %v1795_v20  ;;  %v238_v20 = vld [vmem:[#allocation2 + $0x440] sm:$0xff] }
  0xa2   :  { %1798 = vmatprep.subr.bf16.mxu0 %v1797_v21  ;;  %v240_v21 = vld [vmem:[#allocation2 + $0x450] sm:$0xff] }
  0xa3   :  { %v1839_v24 = vpack.c.bf16 %v240_v21, %v238_v20  ;;  %v1879_v20 = vpack.c.bf16 %v280_v17, %v278_v16  ;;  %v323_v16 = vld [vmem:[#allocation2 + $0x6e8] sm:$0xff]  ;;  %v325_v17 = vld [vmem:[#allocation2 + $0x6f8] sm:$0xff] }
  0xa5   :  { %1800 = vmatpush1.bf16.msra.mxu0 %v1799_v26  ;;  %v242_v26 = vld [vmem:[#allocation2 + $0x460] sm:$0xff] }
  0xa6   :  { %1802 = vmatprep.subr.bf16.mxu0 %v1801_v27  ;;  %v244_v27 = vld [vmem:[#allocation2 + $0x470] sm:$0xff] }
  0xa7   :  { %v1843_v30 = vpack.c.bf16 %v244_v27, %v242_v26  ;;  %v1883_v26 = vpack.c.bf16 %v284_v23, %v282_v22  ;;  %v327_v22 = vld [vmem:[#allocation2 + $0x708] sm:$0xff]  ;;  %v329_v23 = vld [vmem:[#allocation2 + $0x718] sm:$0xff] }
  0xa9   :  { %1804 = vmatpush1.bf16.msra.mxu0 %v1803_v32  ;;  %v246_v32 = vld [vmem:[#allocation2 + $0x480] sm:$0xff] }
  0xaa   :  { %1806 = vmatprep.subr.bf16.mxu0 %v1805_v33  ;;  %v248_v33 = vld [vmem:[#allocation2 + $0x490] sm:$0xff] }
  0xab   :  { %v1847_v36 = vpack.c.bf16 %v248_v33, %v246_v32  ;;  %v1887_v32 = vpack.c.bf16 %v288_v29, %v286_v28  ;;  %v331_v28 = vld [vmem:[#allocation2 + $0x728] sm:$0xff]  ;;  %v333_v29 = vld [vmem:[#allocation2 + $0x738] sm:$0xff] }
  0xad   :  { %1808 = vmatpush1.bf16.msra.mxu0 %v1807_v38  ;;  %v250_v38 = vld [vmem:[#allocation2 + $0x4a0] sm:$0xff] }
  0xae   :  { %1810 = vmatprep.subr.bf16.mxu0 %v1809_v39  ;;  %v252_v39 = vld [vmem:[#allocation2 + $0x4b0] sm:$0xff] }
  0xaf   :  { %v1851_v42 = vpack.c.bf16 %v252_v39, %v250_v38  ;;  %v1891_v38 = vpack.c.bf16 %v292_v35, %v290_v34  ;;  %v335_v34 = vld [vmem:[#allocation2 + $0x748] sm:$0xff]  ;;  %v337_v35 = vld [vmem:[#allocation2 + $0x758] sm:$0xff] }
  0xb1   :  { %1812 = vmatpush1.bf16.msra.mxu0 %v1811_v44  ;;  %v254_v44 = vld [vmem:[#allocation2 + $0x4c0] sm:$0xff] }
  0xb2   :  { %1814 = vmatprep.subr.bf16.mxu0 %v1813_v45  ;;  %v256_v45 = vld [vmem:[#allocation2 + $0x4d0] sm:$0xff] }
  0xb3   :  { %v1855_v48 = vpack.c.bf16 %v256_v45, %v254_v44  ;;  %v98_v44 = vld [vmem:[%s2916_s8 + $0x20] sm:$0xff]  ;;  %v1895_v45 = vpack.c.bf16 %v296_v41, %v294_v40  ;;  %v339_v40 = vld [vmem:[#allocation2 + $0x768] sm:$0xff]  ;;  %v341_v41 = vld [vmem:[#allocation2 + $0x778] sm:$0xff] }
  0xb5   :  { %1816 = vmatpush1.bf16.msra.mxu0 %v1815_v50  ;;  %v258_v50 = vld [vmem:[#allocation2 + $0x4e0] sm:$0xff] }
  0xb6   :  { %1818 = vmatprep.subr.bf16.mxu0 %v1817_v51  ;;  %v260_v51 = vld [vmem:[#allocation2 + $0x4f0] sm:$0xff] }
  0xb7   :  { %v1859_v54 = vpack.c.bf16 %v260_v51, %v258_v50  ;;  %v303_v50 = vld [vmem:[#allocation2 + $0x648] sm:$0xff]  ;;  %v305_v51 = vld [vmem:[#allocation2 + $0x658] sm:$0xff] }
  0xb8   :  { %v1901_v53 = vpack.c.bf16 %v305_v51, %v303_v50  ;;  %v342_v50 = vld [vmem:[#allocation2 + $0x780] sm:$0xff]  ;;  %v344_v51 = vld [vmem:[#allocation2 + $0x790] sm:$0xff] }
  0xb9   :  { %1820 = vmatpush1.bf16.msra.mxu0 %v1819_v56  ;;  %v262_v56 = vld [vmem:[#allocation2 + $0x500] sm:$0xff] }
  0xba   :  { %1822 = vmatprep.subr.bf16.mxu0 %v1821_v57  ;;  %v264_v57 = vld [vmem:[#allocation2 + $0x510] sm:$0xff] }
  0xbb   :  { %v1863_v60 = vpack.c.bf16 %v264_v57, %v262_v56  ;;  %v307_v56 = vld [vmem:[#allocation2 + $0x668] sm:$0xff]  ;;  %v309_v57 = vld [vmem:[#allocation2 + $0x678] sm:$0xff] }
  0xbc   :  { %v1905_v59 = vpack.c.bf16 %v309_v57, %v307_v56  ;;  %v346_v56 = vld [vmem:[#allocation2 + $0x7a0] sm:$0xff]  ;;  %v348_v57 = vld [vmem:[#allocation2 + $0x7b0] sm:$0xff] }
  0xbd   :  { %1824 = vmatpush1.bf16.msra.mxu0 %v1823_v62  ;;  %v266_v62 = vld [vmem:[#allocation2 + $0x520] sm:$0xff] }
  0xbe   :  { %1826 = vmatprep.subr.bf16.mxu0 %v1825_v63  ;;  %v268_v63 = vld [vmem:[#allocation2 + $0x530] sm:$0xff] }
  0xbf   :  { %v1867_v2 = vpack.c.bf16 %v268_v63, %v266_v62  ;;  %v311_v62 = vld [vmem:[#allocation2 + $0x688] sm:$0xff]  ;;  %v313_v63 = vld [vmem:[#allocation2 + $0x698] sm:$0xff] }
  0xc0   :  { %v1909_v1 = vpack.c.bf16 %v313_v63, %v311_v62  ;;  %v350_v62 = vld [vmem:[#allocation2 + $0x7c0] sm:$0xff]  ;;  %v352_v63 = vld [vmem:[#allocation2 + $0x7d0] sm:$0xff] }
  0xc1   :  { %1828 = vmatpush1.bf16.msra.mxu0 %v1827_v4  ;;  %v270_v4 = vld [vmem:[#allocation2 + $0x540] sm:$0xff] }
  0xc2   :  { %1830 = vmatprep.subr.bf16.mxu0 %v1829_v5  ;;  %v272_v5 = vld [vmem:[#allocation2 + $0x550] sm:$0xff] }
  0xc3   :  { %v1871_v8 = vpack.c.bf16 %v272_v5, %v270_v4  ;;  %v315_v4 = vld [vmem:[#allocation2 + $0x6a8] sm:$0xff]  ;;  %v317_v5 = vld [vmem:[#allocation2 + $0x6b8] sm:$0xff] }
  0xc4   :  { %506 = vmatmul.mubr.f32.vlgmr.msra.gmra.mrb[0].mxu0 %v96_v10  ;;  %v274_v10 = vld [vmem:[#allocation2 + $0x560] sm:$0xff]  ;;  %v1913_v7 = vpack.c.bf16 %v317_v5, %v315_v4  ;;  %v356_v5 = vld [vmem:[#allocation2 + $0x7f0] sm:$0xff] }
  0xc5   :  { %1832 = vmatpush1.bf16.msra.mxu0 %v1831_v11  ;;  %576 = vmatprep.mubr.f32.mxu0 %v99_v15  ;;  %v276_v11 = vld [vmem:[#allocation2 + $0x570] sm:$0xff]  ;;  %v354_v4 = vld [vmem:[#allocation2 + $0x7e0] sm:$0xff] }
  0xc6   :  { %1834 = vmatprep.subr.bf16.mxu0 %v1833_v12  ;;  %v279_v12 = vld [vmem:[#allocation2 + $0x588] sm:$0xff]  ;;  %v1875_v14 = vpack.c.bf16 %v276_v11, %v274_v10  ;;  %v321_v11 = vld [vmem:[#allocation2 + $0x6d8] sm:$0xff] }
  0xc7   :  { %v1877_v15 = vpack.c.bf16 %v281_v13, %v279_v12  ;;  %v319_v10 = vld [vmem:[#allocation2 + $0x6c8] sm:$0xff] }
  0xc8   :  { %v1917_v13 = vpack.c.bf16 %v321_v11, %v319_v10  ;;  %v656_v10 = vld [vmem:[%s2894_s3] sm:$0xff]  ;;  %v657_v11 = vld [vmem:[%s2894_s3 + $0x8] sm:$0xff] }
  0xc9   :  { %1836 = vmatpush1.bf16.msra.mxu0 %v1835_v18  ;;  %v283_v18 = vld [vmem:[#allocation2 + $0x5a8] sm:$0xff] }
  0xca   :  { %1838 = vmatprep.subr.bf16.mxu0 %v1837_v19  ;;  %v285_v19 = vld [vmem:[#allocation2 + $0x5b8] sm:$0xff] }
  0xcb   :  { %v1881_v21 = vpack.c.bf16 %v285_v19, %v283_v18  ;;  %v1921_v19 = vpack.c.bf16 %v325_v17, %v323_v16  ;;  %v658_v17 = vld [vmem:[%s2894_s3 + $0x10] sm:$0xff] }
  0xcd   :  { %1840 = vmatpush1.bf16.msra.mxu0 %v1839_v24  ;;  %v287_v24 = vld [vmem:[#allocation2 + $0x5c8] sm:$0xff] }
  0xce   :  { %1842 = vmatprep.subr.bf16.mxu0 %v1841_v25  ;;  %v289_v25 = vld [vmem:[#allocation2 + $0x5d8] sm:$0xff] }
  0xcf   :  { %v1885_v27 = vpack.c.bf16 %v289_v25, %v287_v24  ;;  %v1925_v25 = vpack.c.bf16 %v329_v23, %v327_v22  ;;  %v660_v23 = vld [vmem:[%s2894_s3 + $0x20] sm:$0xff] }
  0xd1   :  { %1844 = vmatpush1.bf16.msra.mxu0 %v1843_v30  ;;  %v291_v30 = vld [vmem:[#allocation2 + $0x5e8] sm:$0xff] }
  0xd2   :  { %1846 = vmatprep.subr.bf16.mxu0 %v1845_v31  ;;  %v293_v31 = vld [vmem:[#allocation2 + $0x5f8] sm:$0xff] }
  0xd3   :  { %v1889_v33 = vpack.c.bf16 %v293_v31, %v291_v30  ;;  %v1929_v31 = vpack.c.bf16 %v333_v29, %v331_v28  ;;  %v662_v29 = vld [vmem:[%s2894_s3 + $0x30] sm:$0xff] }
  0xd5   :  { %1848 = vmatpush1.bf16.msra.mxu0 %v1847_v36  ;;  %v295_v36 = vld [vmem:[#allocation2 + $0x608] sm:$0xff] }
  0xd6   :  { %1850 = vmatprep.subr.bf16.mxu0 %v1849_v37  ;;  %v297_v37 = vld [vmem:[#allocation2 + $0x618] sm:$0xff] }
  0xd7   :  { %v1893_v39 = vpack.c.bf16 %v297_v37, %v295_v36  ;;  %v1933_v37 = vpack.c.bf16 %v337_v35, %v335_v34  ;;  %v664_v35 = vld [vmem:[%s2894_s3 + $0x40] sm:$0xff] }
  0xd9   :  { %1852 = vmatpush1.bf16.msra.mxu0 %v1851_v42  ;;  %v299_v42 = vld [vmem:[#allocation2 + $0x628] sm:$0xff] }
  0xda   :  { %1854 = vmatprep.subr.bf16.mxu0 %v1853_v43  ;;  %v301_v43 = vld [vmem:[#allocation2 + $0x638] sm:$0xff] }
  0xdb   :  { %v1897_v46 = vpack.c.bf16 %v301_v43, %v299_v42  ;;  %v1937_v43 = vpack.c.bf16 %v341_v41, %v339_v40  ;;  %v666_v41 = vld [vmem:[%s2894_s3 + $0x50] sm:$0xff] }
  0xdd   :  { %1856 = vmatpush1.bf16.msra.mxu0 %v1855_v48  ;;  %v300_v48 = vld [vmem:[#allocation2 + $0x630] sm:$0xff] }
  0xde   :  { %1858 = vmatprep.subr.bf16.mxu0 %v1857_v49  ;;  %v101_v49 = vld [vmem:[%s2916_s8 + $0x38] sm:$0xff]  ;;  %v1899_v52 = vpack.c.bf16 %v300_v48, %v298_v47 }
  0xdf   :  { %v345_v47 = vld [vmem:[#allocation2 + $0x798] sm:$0xff] }
  0xe1   :  { %1860 = vmatpush1.bf16.msra.mxu0 %v1859_v54  ;;  %v302_v54 = vld [vmem:[#allocation2 + $0x640] sm:$0xff] }
  0xe2   :  { %1862 = vmatprep.subr.bf16.mxu0 %v1861_v55  ;;  %v304_v55 = vld [vmem:[#allocation2 + $0x650] sm:$0xff] }
  0xe3   :  { %v1903_v58 = vpack.c.bf16 %v304_v55, %v302_v54  ;;  %v1943_v54 = vpack.c.bf16 %v344_v51, %v342_v50  ;;  %v686_v50 = vld [vmem:[%s2894_s3 + $0xf0] sm:$0xff]  ;;  %v687_v51 = vld [vmem:[%s2894_s3 + $0xf8] sm:$0xff] }
  0xe5   :  { %1864 = vmatpush1.bf16.msra.mxu0 %v1863_v60  ;;  %v306_v60 = vld [vmem:[#allocation2 + $0x660] sm:$0xff] }
  0xe6   :  { %1866 = vmatprep.subr.bf16.mxu0 %v1865_v61  ;;  %v308_v61 = vld [vmem:[#allocation2 + $0x670] sm:$0xff] }
  0xe7   :  { %v1907_v0 = vpack.c.bf16 %v308_v61, %v306_v60  ;;  %v1947_v60 = vpack.c.bf16 %v348_v57, %v346_v56  ;;  %v360_v56 = vlaneseq }
  0xe9   :  { %1868 = vmatpush1.bf16.msra.mxu0 %v1867_v2  ;;  %v310_v2 = vld [vmem:[#allocation2 + $0x680] sm:$0xff]  ;;  %v2705_v57 = vshrl.u32 %v360_v56, 7 }
  0xea   :  { %1870 = vmatprep.subr.bf16.mxu0 %v1869_v3  ;;  %v312_v3 = vld [vmem:[#allocation2 + $0x690] sm:$0xff] }
  0xeb   :  { %v1911_v6 = vpack.c.bf16 %v312_v3, %v310_v2  ;;  %v1951_v2 = vpack.c.bf16 %v352_v63, %v350_v62 }
  0xed   :  { %1872 = vmatpush1.bf16.msra.mxu0 %v1871_v8  ;;  %v314_v8 = vld [vmem:[#allocation2 + $0x6a0] sm:$0xff] }
  0xee   :  { %1874 = vmatprep.subr.bf16.mxu0 %v1873_v9  ;;  %v316_v9 = vld [vmem:[#allocation2 + $0x6b0] sm:$0xff] }
  0xef   :  { %v1915_v12 = vpack.c.bf16 %v316_v9, %v314_v8  ;;  %v1955_v8 = vpack.c.bf16 %v356_v5, %v354_v4  ;;  %v1611_v5 = vld [vmem:[%s2895_s4] ss:$0 sm:$0xff] }
  0xf1   :  { %1876 = vmatpush1.bf16.msra.mxu0 %v1875_v14  ;;  %v318_v14 = vld [vmem:[#allocation2 + $0x6c0] sm:$0xff] }
  0xf2   :  { %1878 = vmatprep.subr.bf16.mxu0 %v1877_v15  ;;  %v320_v15 = vld [vmem:[#allocation2 + $0x6d0] sm:$0xff] }
  0xf3   :  { %v1919_v18 = vpack.c.bf16 %v320_v15, %v318_v14  ;;  %v100_v14 = vld [vmem:[%s2916_s8 + $0x30] sm:$0xff]  ;;  %v1959_v15 = vpack.c.bf16 %v657_v11, %v656_v10  ;;  %v2724_v11 = vand.u32 127, %v360_v56 }
  0xf5   :  { %1880 = vmatpush1.bf16.msra.mxu0 %v1879_v20  ;;  %v322_v20 = vld [vmem:[#allocation2 + $0x6e0] sm:$0xff] }
  0xf6   :  { %1882 = vmatprep.subr.bf16.mxu0 %v1881_v21  ;;  %v324_v21 = vld [vmem:[#allocation2 + $0x6f0] sm:$0xff] }
  0xf7   :  { %v1923_v24 = vpack.c.bf16 %v324_v21, %v322_v20  ;;  %v677_v20 = vld [vmem:[%s2894_s3 + $0xa8] sm:$0xff] }
  0xf9   :  { %1884 = vmatpush1.bf16.msra.mxu0 %v1883_v26  ;;  %v326_v26 = vld [vmem:[#allocation2 + $0x700] sm:$0xff] }
  0xfa   :  { %1886 = vmatprep.subr.bf16.mxu0 %v1885_v27  ;;  %v328_v27 = vld [vmem:[#allocation2 + $0x710] sm:$0xff] }
  0xfb   :  { %v1927_v30 = vpack.c.bf16 %v328_v27, %v326_v26  ;;  %v679_v26 = vld [vmem:[%s2894_s3 + $0xb8] sm:$0xff] }
  0xfd   :  { %1888 = vmatpush1.bf16.msra.mxu0 %v1887_v32  ;;  %v330_v32 = vld [vmem:[#allocation2 + $0x720] sm:$0xff] }
  0xfe   :  { %1890 = vmatprep.subr.bf16.mxu0 %v1889_v33  ;;  %v332_v33 = vld [vmem:[#allocation2 + $0x730] sm:$0xff] }
  0xff   :  { %v1931_v36 = vpack.c.bf16 %v332_v33, %v330_v32  ;;  %v681_v32 = vld [vmem:[%s2894_s3 + $0xc8] sm:$0xff] }
 0x101   :  { %1892 = vmatpush1.bf16.msra.mxu0 %v1891_v38  ;;  %v334_v38 = vld [vmem:[#allocation2 + $0x740] sm:$0xff] }
 0x102   :  { %1894 = vmatprep.subr.bf16.mxu0 %v1893_v39  ;;  %v336_v39 = vld [vmem:[#allocation2 + $0x750] sm:$0xff] }
 0x103   :  { %v1935_v42 = vpack.c.bf16 %v336_v39, %v334_v38  ;;  %v683_v38 = vld [vmem:[%s2894_s3 + $0xd8] sm:$0xff] }
 0x104   :  { %577 = vmatmul.mubr.f32.vlgmr.msra.gmra.mrb[0].mxu0 %v98_v44  ;;  %v338_v44 = vld [vmem:[#allocation2 + $0x760] sm:$0xff] }
 0x105   :  { %1896 = vmatpush1.bf16.msra.mxu0 %v1895_v45  ;;  %647 = vmatprep.mubr.f32.mxu0 %v101_v49  ;;  %v340_v45 = vld [vmem:[#allocation2 + $0x770] sm:$0xff] }
 0x106   :  { %1898 = vmatprep.subr.bf16.mxu0 %v1897_v46  ;;  %v343_v46 = vld [vmem:[#allocation2 + $0x788] sm:$0xff]  ;;  %v1939_v48 = vpack.c.bf16 %v340_v45, %v338_v44 }
 0x107   :  { %v1941_v49 = vpack.c.bf16 %v345_v47, %v343_v46  ;;  %v685_v44 = vld [vmem:[%s2894_s3 + $0xe8] sm:$0xff]  ;;  %v668_v47 = vld [vmem:[%s2894_s3 + $0x60] sm:$0xff] }
 0x109   :  { %1900 = vmatpush1.bf16.msra.mxu0 %v1899_v52  ;;  %v347_v52 = vld [vmem:[#allocation2 + $0x7a8] sm:$0xff] }
 0x10a   :  { %1902 = vmatprep.subr.bf16.mxu0 %v1901_v53  ;;  %v349_v53 = vld [vmem:[#allocation2 + $0x7b8] sm:$0xff] }
 0x10b   :  { %v1945_v55 = vpack.c.bf16 %v349_v53, %v347_v52  ;;  %v1985_v52 = vpack.c.bf16 %v687_v51, %v686_v50  ;;  %v670_v53 = vld [vmem:[%s2894_s3 + $0x70] sm:$0xff]  ;;  %v930_v50 = vld [vmem:[#allocation5 + $0x8] sm:$0xff] }
 0x10c   :  { %v934_v51 = vld [vmem:[#allocation5 + $0x28] sm:$0xff] }
 0x10d   :  { %1904 = vmatpush1.bf16.msra.mxu0 %v1903_v58  ;;  %v351_v58 = vld [vmem:[#allocation2 + $0x7c8] sm:$0xff] }
 0x10e   :  { %1906 = vmatprep.subr.bf16.mxu0 %v1905_v59  ;;  %v353_v59 = vld [vmem:[#allocation2 + $0x7d8] sm:$0xff] }
 0x10f   :  { %v1949_v61 = vpack.c.bf16 %v353_v59, %v351_v58  ;;  %v2708_v58 = vsub.s32 0, %v2705_v57  ;;  %v358_v59 = vld [vmem:[%s2893_s2] sm:$0x3] }
 0x111   :  { %1908 = vmatpush1.bf16.msra.mxu0 %v1907_v0  ;;  %v355_v0 = vld [vmem:[#allocation2 + $0x7e8] sm:$0xff] }
 0x112   :  { %1910 = vmatprep.subr.bf16.mxu0 %v1909_v1  ;;  %v357_v1 = vld [vmem:[#allocation2 + $0x7f8] sm:$0xff] }
 0x113   :  { %v1953_v3 = vpack.c.bf16 %v357_v1, %v355_v0 }
 0x115   :  { %1912 = vmatpush1.bf16.msra.mxu0 %v1911_v6  ;;  %v672_v6 = vld [vmem:[%s2894_s3 + $0x80] sm:$0xff] }
 0x116   :  { %1914 = vmatprep.subr.bf16.mxu0 %v1913_v7  ;;  %v673_v7 = vld [vmem:[%s2894_s3 + $0x88] sm:$0xff] }
 0x117   :  { %v1957_v9 = vpack.c.bf16 %v673_v7, %v672_v6 }
 0x119   :  { %1916 = vmatpush1.bf16.msra.mxu0 %v1915_v12  ;;  %v674_v12 = vld [vmem:[%s2894_s3 + $0x90] sm:$0xff] }
 0x11a   :  { %1918 = vmatprep.subr.bf16.mxu0 %v1917_v13  ;;  %v675_v13 = vld [vmem:[%s2894_s3 + $0x98] sm:$0xff] }
 0x11b   :  { %v1961_v16 = vpack.c.bf16 %v675_v13, %v674_v12 }
 0x11d   :  { %1920 = vmatpush1.bf16.msra.mxu0 %v1919_v18  ;;  %v659_v18 = vld [vmem:[%s2894_s3 + $0x18] sm:$0xff] }
 0x11e   :  { %1922 = vmatprep.subr.bf16.mxu0 %v1921_v19  ;;  %v676_v19 = vld [vmem:[%s2894_s3 + $0xa0] sm:$0xff]  ;;  %v1963_v21 = vpack.c.bf16 %v659_v18, %v658_v17 }
 0x11f   :  { %v1965_v22 = vpack.c.bf16 %v677_v20, %v676_v19 }
 0x121   :  { %1924 = vmatpush1.bf16.msra.mxu0 %v1923_v24  ;;  %v661_v24 = vld [vmem:[%s2894_s3 + $0x28] sm:$0xff] }
 0x122   :  { %1926 = vmatprep.subr.bf16.mxu0 %v1925_v25  ;;  %v678_v25 = vld [vmem:[%s2894_s3 + $0xb0] sm:$0xff]  ;;  %v1967_v27 = vpack.c.bf16 %v661_v24, %v660_v23  ;;  %v2452_v24 = vmov 0.0|0.0  }
 0x123   :  { %v1969_v28 = vpack.c.bf16 %v679_v26, %v678_v25  ;;  %v798_v23 = vld [vmem:[%s2896_s5 + $0x10] sm:$0xff]  ;;  %1989 = vmatprep.subr.bf16.mxu1 %v2452_v24  ;;  %v799_v26 = vld [vmem:[%s2896_s5 + $0x18] sm:$0xff] }
 0x125   :  { %1928 = vmatpush1.bf16.msra.mxu0 %v1927_v30  ;;  %v663_v30 = vld [vmem:[%s2894_s3 + $0x38] sm:$0xff] }
 0x126   :  { %1930 = vmatprep.subr.bf16.mxu0 %v1929_v31  ;;  %v680_v31 = vld [vmem:[%s2894_s3 + $0xc0] sm:$0xff]  ;;  %v1971_v33 = vpack.c.bf16 %v663_v30, %v662_v29  ;;  %v801_v29 = vld [vmem:[%s2896_s5 + $0x28] sm:$0xff] }
 0x127   :  { %v1973_v34 = vpack.c.bf16 %v681_v32, %v680_v31  ;;  %v802_v31 = vld [vmem:[%s2896_s5 + $0x30] sm:$0xff]  ;;  %v803_v32 = vld [vmem:[%s2896_s5 + $0x38] sm:$0xff] }
 0x129   :  { %1932 = vmatpush1.bf16.msra.mxu0 %v1931_v36  ;;  %v665_v36 = vld [vmem:[%s2894_s3 + $0x48] sm:$0xff] }
 0x12a   :  { %1934 = vmatprep.subr.bf16.mxu0 %v1933_v37  ;;  %v682_v37 = vld [vmem:[%s2894_s3 + $0xd0] sm:$0xff]  ;;  %v1975_v39 = vpack.c.bf16 %v665_v36, %v664_v35  ;;  %v805_v35 = vld [vmem:[%s2896_s5 + $0x48] sm:$0xff] }
 0x12b   :  { %v1977_v40 = vpack.c.bf16 %v683_v38, %v682_v37  ;;  %v806_v37 = vld [vmem:[%s2896_s5 + $0x50] sm:$0xff]  ;;  %v807_v38 = vld [vmem:[%s2896_s5 + $0x58] sm:$0xff] }
 0x12d   :  { %1936 = vmatpush1.bf16.msra.mxu0 %v1935_v42  ;;  %v667_v42 = vld [vmem:[%s2894_s3 + $0x58] sm:$0xff] }
 0x12e   :  { %1938 = vmatprep.subr.bf16.mxu0 %v1937_v43  ;;  %v684_v43 = vld [vmem:[%s2894_s3 + $0xe0] sm:$0xff]  ;;  %v1979_v45 = vpack.c.bf16 %v667_v42, %v666_v41  ;;  %v809_v41 = vld [vmem:[%s2896_s5 + $0x68] sm:$0xff] }
 0x12f   :  { %v1981_v46 = vpack.c.bf16 %v685_v44, %v684_v43 }
 0x131   :  { %1940 = vmatpush1.bf16.msra.mxu0 %v1939_v48  ;;  %v669_v48 = vld [vmem:[%s2894_s3 + $0x68] sm:$0xff] }
 0x132   :  { %1942 = vmatprep.subr.bf16.mxu0 %v1941_v49  ;;  %v1983_v49 = vpack.c.bf16 %v669_v48, %v668_v47  ;;  %v810_v47 = vld [vmem:[%s2896_s5 + $0x70] sm:$0xff]  ;;  %v811_v48 = vld [vmem:[%s2896_s5 + $0x78] sm:$0xff] }
 0x135   :  { %1944 = vmatpush1.bf16.msra.mxu0 %v1943_v54  ;;  %v671_v54 = vld [vmem:[%s2894_s3 + $0x78] sm:$0xff] }
 0x136   :  { %1946 = vmatprep.subr.bf16.mxu0 %v1945_v55  ;;  %v1987_v55 = vpack.c.bf16 %v671_v54, %v670_v53  ;;  %v2454_v53 = vmov 0.0  }
 0x137   :  { %1698 = vmatprep.mubr.msk.f32.mxu1 %vm2453_vm2, %v2454_v53 }
 0x139   :  { %1948 = vmatpush1.bf16.msra.mxu0 %v1947_v60  ;;  %v2714_v60 = vsub.s32 1, %v2705_v57 }
 0x13a   :  { %1950 = vmatprep.subr.bf16.mxu0 %v1949_v61  ;;  %v363_v61 = vrot.slane %v358_v59, %v2708_v58 }
 0x13b   :  { %v367_v62 = vrot.slane %v358_v59, %v2714_v60 }
 0x13d   :  { %1952 = vmatpush1.bf16.msra.mxu0 %v1951_v2 }
 0x13e   :  { %1954 = vmatprep.subr.bf16.mxu0 %v1953_v3 }
 0x141   :  { %1956 = vmatpush1.bf16.msra.mxu0 %v1955_v8 }
 0x142   :  { %1958 = vmatprep.subr.bf16.mxu0 %v1957_v9 }
 0x144   :  { %648 = vmatmul.mubr.f32.vlgmr.msra.gmra.mrb[0].mxu0 %v100_v14 }
 0x145   :  { %1960 = vmatpush3.bf16.msra.mxu0 %v1959_v15 }
 0x146   :  { %1962 = vmatprep.subr.bf16.mxu0 %v1961_v16 }
 0x149   :  { %1964 = vmatpush3.bf16.msra.mxu0 %v1963_v21  ;;  %v796_v21 = vld [vmem:[%s2896_s5] sm:$0xff] }
 0x14a   :  { %1966 = vmatprep.subr.bf16.mxu0 %v1965_v22  ;;  %v797_v22 = vld [vmem:[%s2896_s5 + $0x8] sm:$0xff] }
 0x14b   :  { %v1990_v25 = vpack.c.bf16 %v797_v22, %v796_v21  ;;  %v946_v21 = vld [vmem:[#allocation5 + $0x88] sm:$0xff] }
 0x14c   :  { %v950_v22 = vld [vmem:[#allocation5 + $0xa8] sm:$0xff] }
 0x14d   :  { %1968 = vmatpush3.bf16.msra.mxu0 %v1967_v27  ;;  %1991 = vmatpush3.bf16.msra.mxu1 %v1990_v25  ;;  %v1993_v27 = vpack.c.bf16 %v799_v26, %v798_v23  ;;  %v2455_v23 = vmov 1.0   ;;  %v2021_v25 = vpack.c.bf16 %v950_v22, %v946_v21  ;;  %v945_v26 = vld [vmem:[#allocation5 + $0x80] sm:$0xff]  ;;  %v1018_v22 = vld [vmem:[#allocation5 + $0x2c8] sm:$0xff] }
 0x14e   :  { %1970 = vmatprep.subr.bf16.mxu0 %v1969_v28  ;;  %1992 = vmatprep.subr.bf16.mxu1 %v2452_v24  ;;  %v800_v28 = vld [vmem:[%s2896_s5 + $0x20] sm:$0xff] }
 0x14f   :  { %v1996_v30 = vpack.c.bf16 %v801_v29, %v800_v28  ;;  %v954_v28 = vld [vmem:[#allocation5 + $0xc8] sm:$0xff]  ;;  %v1013_v21 = vld [vmem:[#allocation5 + $0x2a0] sm:$0xff] }
 0x150   :  { %v958_v29 = vld [vmem:[#allocation5 + $0xe8] sm:$0xff] }
 0x151   :  { %1972 = vmatpush3.bf16.msra.mxu0 %v1971_v33  ;;  %1994 = vmatpush3.bf16.msra.mxu1 %v1993_v27  ;;  %v1999_v33 = vpack.c.bf16 %v803_v32, %v802_v31  ;;  %v949_v27 = vld [vmem:[#allocation5 + $0xa0] sm:$0xff] }
 0x152   :  { %1974 = vmatprep.subr.bf16.mxu0 %v1973_v34  ;;  %1995 = vmatprep.subr.bf16.mxu1 %v2452_v24  ;;  %v804_v34 = vld [vmem:[%s2896_s5 + $0x40] sm:$0xff] }
 0x153   :  { %v2002_v36 = vpack.c.bf16 %v805_v35, %v804_v34  ;;  %v953_v31 = vld [vmem:[#allocation5 + $0xc0] sm:$0xff]  ;;  %v966_v34 = vld [vmem:[#allocation5 + $0x128] sm:$0xff] }
 0x154   :  { %v957_v32 = vld [vmem:[#allocation5 + $0xe0] sm:$0xff] }
 0x155   :  { %1976 = vmatpush3.bf16.msra.mxu0 %v1975_v39  ;;  %1997 = vmatpush3.bf16.msra.mxu1 %v1996_v30  ;;  %v2005_v39 = vpack.c.bf16 %v807_v38, %v806_v37  ;;  %v2023_v30 = vpack.c.bf16 %v949_v27, %v945_v26  ;;  %v2027_v35 = vpack.c.bf16 %v957_v32, %v953_v31  ;;  %v961_v37 = vld [vmem:[#allocation5 + $0x100] sm:$0xff] }
 0x156   :  { %1978 = vmatprep.subr.bf16.mxu0 %v1977_v40  ;;  %1998 = vmatprep.subr.bf16.mxu1 %v2452_v24  ;;  %v808_v40 = vld [vmem:[%s2896_s5 + $0x60] sm:$0xff] }
 0x157   :  { %v2008_v42 = vpack.c.bf16 %v809_v41, %v808_v40  ;;  %v965_v38 = vld [vmem:[#allocation5 + $0x120] sm:$0xff]  ;;  %v974_v40 = vld [vmem:[#allocation5 + $0x168] sm:$0xff] }
 0x158   :  { %v2031_v41 = vpack.c.bf16 %v965_v38, %v961_v37  ;;  %v1017_v26 = vld [vmem:[#allocation5 + $0x2c0] sm:$0xff] }
 0x159   :  { %1980 = vmatpush3.bf16.msra.mxu0 %v1979_v45  ;;  %2000 = vmatpush3.bf16.msra.mxu1 %v1999_v33  ;;  %v962_v33 = vld [vmem:[#allocation5 + $0x108] sm:$0xff]  ;;  %v1021_v27 = vld [vmem:[#allocation5 + $0x2e0] sm:$0xff] }
 0x15a   :  { %1982 = vmatprep.subr.bf16.mxu0 %v1981_v46  ;;  %2001 = vmatprep.subr.bf16.mxu1 %v2452_v24  ;;  %v1025_v31 = vld [vmem:[#allocation5 + $0x300] sm:$0xff] }
 0x15b   :  { %v1029_v32 = vld [vmem:[#allocation5 + $0x320] sm:$0xff] }
 0x15c   :  { %v1033_v37 = vld [vmem:[#allocation5 + $0x340] sm:$0xff] }
 0x15d   :  { %1984 = vmatpush3.bf16.msra.mxu0 %v1983_v49  ;;  %2003 = vmatpush3.bf16.msra.mxu1 %v2002_v36  ;;  %v2011_v49 = vpack.c.bf16 %v811_v48, %v810_v47  ;;  %v2029_v36 = vpack.c.bf16 %v966_v34, %v962_v33  ;;  %v1034_v33 = vld [vmem:[#allocation5 + $0x348] sm:$0xff]  ;;  %v1037_v38 = vld [vmem:[#allocation5 + $0x360] sm:$0xff] }
 0x15e   :  { %1986 = vmatprep.subr.bf16.mxu0 %v1985_v52  ;;  %2004 = vmatprep.subr.bf16.mxu1 %v2452_v24  ;;  %v2013_v52 = vpack.c.bf16 %v934_v51, %v930_v50  ;;  %v981_v50 = vld [vmem:[#allocation5 + $0x1a0] sm:$0xff]  ;;  %v986_v51 = vld [vmem:[#allocation5 + $0x1c8] sm:$0xff] }
 0x15f   :  { %v1038_v34 = vld [vmem:[#allocation5 + $0x368] sm:$0xff] }
 0x161   :  { %1988 = vmatpush3.bf16.msra.mxu0 %v1987_v55  ;;  %2006 = vmatpush3.bf16.msra.mxu1 %v2005_v39  ;;  %v970_v39 = vld [vmem:[#allocation5 + $0x148] sm:$0xff] }
 0x162   :  { %2007 = vmatprep.subr.bf16.mxu1 %v2452_v24 }
 0x165   :  { %2009 = vmatpush3.bf16.msra.mxu1 %v2008_v42  ;;  %v2033_v42 = vpack.c.bf16 %v974_v40, %v970_v39  ;;  %v1042_v39 = vld [vmem:[#allocation5 + $0x388] sm:$0xff] }
 0x166   :  { %2010 = vmatprep.subr.bf16.mxu1 %v2452_v24  ;;  %v1046_v40 = vld [vmem:[#allocation5 + $0x3a8] sm:$0xff] }
 0x169   :  { %2012 = vmatpush3.bf16.msra.mxu1 %v2011_v49  ;;  %v977_v49 = vld [vmem:[#allocation5 + $0x180] sm:$0xff] }
 0x16a   :  { %2014 = vmatprep.subr.bf16.mxu1 %v2013_v52  ;;  %v990_v52 = vld [vmem:[#allocation5 + $0x1e8] sm:$0xff]  ;;  %v2039_v53 = vpack.c.bf16 %v981_v50, %v977_v49  ;;  %v1049_v50 = vld [vmem:[#allocation5 + $0x3c0] sm:$0xff] }
 0x217   :  { %v649_v63 = vpop.f32.mrb[0].mxu0 }
 0x218   :  { %v2269_v0 = vadd.f32 %v649_v63, %v363_v61  ;;  %v651_v1 = vpop.f32.mrb[1].mxu0  ;;  %v2792_v61 = vld [vmem:[%s2897_s6] sm:$0x3] }
 0x219   :  { %v2270_v2 = vadd.f32 %v651_v1, %v367_v62  ;;  %v2801_v1 = vld [vmem:[%s2898_s7] sm:$0x3] }
 0x21a   :  { %654 = vst [vmem:[#allocation11] sm:$0xff] %v2269_v0 }
 0x21b   :  { %655 = vst [vmem:[#allocation11 + $0x8] sm:$0xff] %v2270_v2  ;;  %759 = vmatprep.mubr.f32.mxu0 %v2270_v2  ;;  %v886_v3 = vadd.f32 %v2270_v2, %v2269_v0 }
 0x21c   :  { %760 = vmatmul.mubr.f32.vlgmr.msra.gmra.mrb[2].mxu0 %v2269_v0 }
 0x21d   :  { %887 = vadd.xlane.f32.xlu1 %v886_v3  ;;  %v929_v3 = vld [vmem:[#allocation5] sm:$0xff] }
 0x2aa   :  { %v888_v9 = vpop.xlane.xlu1 %887 }
 0x2ab   :  { %v890_v10 = vmul.f32 0.00390625, %v888_v9  ;;  %v924_v9 = vrot.slane %v2801_v1, %v2714_v60 }
 0x2ad   :  { %v2728_v13 = vsub.f32 %v2269_v0, %v890_v10  ;;  %v2730_v14 = vsub.f32 %v2270_v2, %v890_v10  ;;  %v911_v0 = vrot.slane %v2792_v61, %v2714_v60  ;;  %v938_v10 = vld [vmem:[#allocation5 + $0x48] sm:$0xff] }
 0x2af   :  { %v893_v18 = vmul.f32 %v2728_v13, %v2728_v13  ;;  %v894_v19 = vmul.f32 %v2730_v14, %v2730_v14 }
 0x2b1   :  { %v895_v20 = vadd.f32 %v894_v19, %v893_v18  ;;  %v937_v18 = vld [vmem:[#allocation5 + $0x40] sm:$0xff] }
 0x2b2   :  { %v941_v19 = vld [vmem:[#allocation5 + $0x60] sm:$0xff] }
 0x2b3   :  { %v2019_v24 = vpack.c.bf16 %v941_v19, %v937_v18  ;;  %v1009_v19 = vld [vmem:[#allocation5 + $0x280] sm:$0xff] }
 0x2ef   :  { %v1646_v4 = vpop.f32.mrb[2].mxu0 }
 0x2f0   :  { %v1647_v6 = vpop.f32.mrb[3].mxu0 }
 0x2f1   :  { %v1648_v7 = vadd.f32 %v1647_v6, %v1646_v4  ;;  %v933_v4 = vld [vmem:[#allocation5 + $0x20] sm:$0xff] }
 0x2f3   :  { %v2721_v8 = vadd.f32 %v1648_v7, %v1611_v5 }
 0x2f5   :  { %765 = vmax.xlane.f32.xlu0 %v2721_v8 }
 0x382   :  { %v2726_v12 = vpop.xlane.xlu0 %765 }
 0x383   :  { %vm777_vm0 = vcmp.eq.f32.partialorder %v2721_v8, %v2726_v12 }
 0x384   :  { %v778_v15 = vsel %vm777_vm0, %v2724_v11, 128 }
 0x385   :  { %v780_v16 = vshra.s32 %v778_v15, 16  ;;  %v779_v43 = vand.u32 65535, %v778_v15  ;;  %v942_v15 = vld [vmem:[#allocation5 + $0x68] sm:$0xff] }
 0x387   :  { %v782_v17 = vcvt.s32.f32 %v780_v16  ;;  %v781_v45 = vcvt.s32.f32 %v779_v43  ;;  %v2015_v16 = vpack.c.bf16 %v933_v4, %v929_v3  ;;  %v969_v43 = vld [vmem:[#allocation5 + $0x140] sm:$0xff] }
 0x388   :  { %v993_v3 = vld [vmem:[#allocation5 + $0x200] sm:$0xff] }
 0x389   :  { %783 = vmin.xlane.f32.xlu0 %v782_v17  ;;  %v997_v4 = vld [vmem:[#allocation5 + $0x220] sm:$0xff] }
 0x38d   :  { %896 = vadd.xlane.f32.xlu0 %v895_v20 }
 0x416   :  { %v784_v44 = vpop.xlane.xlu0 %783 }
 0x417   :  { %vm785_vm1 = vcmp.eq.f32.partialorder %v782_v17, %v784_v44  ;;  %v790_v62 = vcvt.f32.s32 %v784_v44  ;;  %v2017_v17 = vpack.c.bf16 %v942_v15, %v938_v10  ;;  %v973_v44 = vld [vmem:[#allocation5 + $0x160] sm:$0xff] }
 0x418   :  { %v786_v46 = vsel %vm785_vm1, %v781_v45, inf  ;;  %v978_v45 = vld [vmem:[#allocation5 + $0x188] sm:$0xff]  ;;  %v2035_v47 = vpack.c.bf16 %v973_v44, %v969_v43  ;;  %v1001_v10 = vld [vmem:[#allocation5 + $0x240] sm:$0xff] }
 0x419   :  { %787 = vmin.xlane.f32.xlu1 %v786_v46  ;;  %v791_v5 = vshll.u32 %v790_v62, 16  ;;  %v982_v46 = vld [vmem:[#allocation5 + $0x1a8] sm:$0xff]  ;;  %v1005_v15 = vld [vmem:[#allocation5 + $0x260] sm:$0xff] }
 0x41a   :  { %v897_v54 = vpop.xlane.xlu0 %896  ;;  %v2037_v48 = vpack.c.bf16 %v982_v46, %v978_v45  ;;  %v994_v62 = vld [vmem:[#allocation5 + $0x208] sm:$0xff]  ;;  %v1041_v43 = vld [vmem:[#allocation5 + $0x380] sm:$0xff] }
 0x41b   :  { %v898_v55 = vmul.f32 0.00390625, %v897_v54  ;;  %v2041_v54 = vpack.c.bf16 %v990_v52, %v986_v51  ;;  %v1045_v44 = vld [vmem:[#allocation5 + $0x3a0] sm:$0xff]  ;;  %v1050_v45 = vld [vmem:[#allocation5 + $0x3c8] sm:$0xff] }
 0x41c   :  { %v1054_v46 = vld [vmem:[#allocation5 + $0x3e8] sm:$0xff]  ;;  %v1053_v51 = vld [vmem:[#allocation5 + $0x3e0] sm:$0xff] }
 0x41d   :  { %v899_v56 = vadd.f32 1e-05, %v898_v55  ;;  %v985_v55 = vld [vmem:[#allocation5 + $0x1c0] sm:$0xff]  ;;  %v2073_v49 = vpack.c.bf16 %v1054_v46, %v1050_v45  ;;  %v991_v45 = vld [vmem:[#allocation5 + $0x1f0] sm:$0xff]  ;;  %v996_v46 = vld [vmem:[#allocation5 + $0x218] sm:$0xff] }
 0x41f   :  { %2295 = vrsqrt.f32 %v899_v56  ;;  %v989_v56 = vld [vmem:[#allocation5 + $0x1e0] sm:$0xff] }
 0x429   :  { %v2787_v59 = vpop.eup %2295 }
 0x42a   :  { %v902_v63 = vmul.f32 %v2787_v59, %v2730_v14  ;;  %v901_v52 = vmul.f32 %v2787_v59, %v2728_v13  ;;  %v939_v59 = vld [vmem:[#allocation5 + $0x50] sm:$0xff] }
 0x42c   :  { %v915_v7 = vmul.f32 %v911_v0, %v902_v63  ;;  %v998_v63 = vld [vmem:[#allocation5 + $0x228] sm:$0xff]  ;;  %v2043_v0 = vpack.c.bf16 %v989_v56, %v985_v55  ;;  %v2075_v55 = vpack.c.bf16 %v1053_v51, %v1049_v50  ;;  %v920_v56 = vrot.slane %v2801_v1, %v2708_v58  ;;  %v995_v50 = vld [vmem:[#allocation5 + $0x210] sm:$0xff] }
 0x42d   :  { %v999_v51 = vld [vmem:[#allocation5 + $0x230] sm:$0xff] }
 0x42e   :  { %v2806_v20 = vadd.f32 %v924_v9, %v915_v7  ;;  %v2047_v7 = vpack.c.bf16 %v997_v4, %v993_v3  ;;  %v944_v3 = vld [vmem:[#allocation5 + $0x78] sm:$0xff] }
 0x4a6   :  { %v788_v2 = vpop.xlane.xlu1 %787 }
 0x4a7   :  { %v789_v6 = vcvt.f32.s32 %v788_v2  ;;  %v2045_v2 = vpack.c.bf16 %v998_v63, %v994_v62 }
 0x4a9   :  { %v792_v14 = vadd.s32 %v791_v5, %v789_v6  ;;  %v1002_v5 = vld [vmem:[#allocation5 + $0x248] sm:$0xff] }
 0x4aa   :  { %v1006_v6 = vld [vmem:[#allocation5 + $0x268] sm:$0xff] }
 0x4ab   :  { %vm793_vm3 = vcmp.eq.s32.totalorder %v2724_v11, %v792_v14  ;;  %v2025_v11 = vpack.c.bf16 %v958_v29, %v954_v28  ;;  %v2049_v9 = vpack.c.bf16 %v1006_v6, %v1002_v5  ;;  %v1010_v14 = vld [vmem:[#allocation5 + $0x288] sm:$0xff]  ;;  %v943_v6 = vld [vmem:[#allocation5 + $0x70] sm:$0xff] }
 0x4ac   :  { %1699 = vmatmul.mubr.msk.f32.vlgmr.msra.gmra.mrb[0].mxu1 %vm793_vm3, %v2455_v23  ;;  %v1022_v23 = vld [vmem:[#allocation5 + $0x2e8] sm:$0xff]  ;;  %v2083_v1 = vpack.c.bf16 %v943_v6, %v939_v59  ;;  %v1024_v59 = vld [vmem:[#allocation5 + $0x2f8] sm:$0xff] }
 0x4ad   :  { %2016 = vmatpush1.bf16.msra.mxu1 %v2015_v16  ;;  %1143 = vmatprep.mubr.f32.mxu1 %v2806_v20  ;;  %v1014_v16 = vld [vmem:[#allocation5 + $0x2a8] sm:$0xff] }
 0x4ae   :  { %2018 = vmatprep.subr.bf16.mxu1 %v2017_v17  ;;  %v2051_v17 = vpack.c.bf16 %v1005_v15, %v1001_v10  ;;  %v2053_v18 = vpack.c.bf16 %v1014_v16, %v1010_v14  ;;  %v1026_v28 = vld [vmem:[#allocation5 + $0x308] sm:$0xff]  ;;  %v947_v15 = vld [vmem:[#allocation5 + $0x90] sm:$0xff]  ;;  %v956_v16 = vld [vmem:[#allocation5 + $0xd8] sm:$0xff] }
 0x4af   :  { %v1030_v29 = vld [vmem:[#allocation5 + $0x328] sm:$0xff]  ;;  %v951_v14 = vld [vmem:[#allocation5 + $0xb0] sm:$0xff] }
 0x4b1   :  { %2020 = vmatpush1.bf16.msra.mxu1 %v2019_v24  ;;  %v2055_v24 = vpack.c.bf16 %v1013_v21, %v1009_v19  ;;  %v955_v21 = vld [vmem:[#allocation5 + $0xd0] sm:$0xff] }
 0x4b2   :  { %2022 = vmatprep.subr.bf16.mxu1 %v2021_v25  ;;  %v2057_v25 = vpack.c.bf16 %v1022_v23, %v1018_v22  ;;  %v959_v22 = vld [vmem:[#allocation5 + $0xf0] sm:$0xff]  ;;  %v964_v23 = vld [vmem:[#allocation5 + $0x118] sm:$0xff] }
 0x4b5   :  { %2024 = vmatpush1.bf16.msra.mxu1 %v2023_v30  ;;  %v2059_v30 = vpack.c.bf16 %v1021_v27, %v1017_v26  ;;  %v963_v27 = vld [vmem:[#allocation5 + $0x110] sm:$0xff] }
 0x4b6   :  { %2026 = vmatprep.subr.bf16.mxu1 %v2025_v11  ;;  %v2061_v11 = vpack.c.bf16 %v1030_v29, %v1026_v28  ;;  %v967_v28 = vld [vmem:[#allocation5 + $0x130] sm:$0xff]  ;;  %v972_v29 = vld [vmem:[#allocation5 + $0x158] sm:$0xff] }
 0x4b9   :  { %2028 = vmatpush1.bf16.msra.mxu1 %v2027_v35  ;;  %v2063_v35 = vpack.c.bf16 %v1029_v32, %v1025_v31  ;;  %v971_v32 = vld [vmem:[#allocation5 + $0x150] sm:$0xff] }
 0x4ba   :  { %2030 = vmatprep.subr.bf16.mxu1 %v2029_v36  ;;  %v2065_v36 = vpack.c.bf16 %v1038_v34, %v1034_v33  ;;  %v975_v33 = vld [vmem:[#allocation5 + $0x170] sm:$0xff]  ;;  %v980_v34 = vld [vmem:[#allocation5 + $0x198] sm:$0xff] }
 0x4bd   :  { %2032 = vmatpush1.bf16.msra.mxu1 %v2031_v41  ;;  %v2067_v41 = vpack.c.bf16 %v1037_v38, %v1033_v37  ;;  %v979_v38 = vld [vmem:[#allocation5 + $0x190] sm:$0xff] }
 0x4be   :  { %2034 = vmatprep.subr.bf16.mxu1 %v2033_v42  ;;  %v2069_v42 = vpack.c.bf16 %v1046_v40, %v1042_v39  ;;  %v983_v39 = vld [vmem:[#allocation5 + $0x1b0] sm:$0xff]  ;;  %v988_v40 = vld [vmem:[#allocation5 + $0x1d8] sm:$0xff] }
 0x4c1   :  { %2036 = vmatpush1.bf16.msra.mxu1 %v2035_v47  ;;  %v2071_v47 = vpack.c.bf16 %v1045_v44, %v1041_v43  ;;  %v987_v44 = vld [vmem:[#allocation5 + $0x1d0] sm:$0xff] }
 0x4c2   :  { %2038 = vmatprep.subr.bf16.mxu1 %v2037_v48  ;;  %v907_v48 = vrot.slane %v2792_v61, %v2708_v58  ;;  %v940_v61 = vld [vmem:[#allocation5 + $0x58] sm:$0xff] }
 0x4c3   :  { %v2081_v13 = vpack.c.bf16 %v944_v3, %v940_v61  ;;  %v1011_v3 = vld [vmem:[#allocation5 + $0x290] sm:$0xff] }
 0x4c4   :  { %v914_v62 = vmul.f32 %v907_v48, %v901_v52  ;;  %v2107_v48 = vpack.c.bf16 %v991_v45, %v987_v44  ;;  %v1004_v52 = vld [vmem:[#allocation5 + $0x258] sm:$0xff] }
 0x4c5   :  { %2040 = vmatpush1.bf16.msra.mxu1 %v2039_v53  ;;  %v932_v53 = vld [vmem:[#allocation5 + $0x18] sm:$0xff] }
 0x4c6   :  { %2042 = vmatprep.subr.bf16.mxu1 %v2041_v54  ;;  %v936_v54 = vld [vmem:[#allocation5 + $0x38] sm:$0xff]  ;;  %v2815_v5 = vadd.f32 %v920_v56, %v914_v62  ;;  %v1003_v56 = vld [vmem:[#allocation5 + $0x250] sm:$0xff] }
 0x4c7   :  { %v2077_v63 = vpack.c.bf16 %v936_v54, %v932_v53  ;;  %v1008_v53 = vld [vmem:[#allocation5 + $0x278] sm:$0xff]  ;;  %v2111_v54 = vpack.c.bf16 %v999_v51, %v995_v50  ;;  %v1007_v62 = vld [vmem:[#allocation5 + $0x270] sm:$0xff] }
 0x4c8   :  { %v1232_v44 = vld [vmem:[#allocation7 + $0x38] sm:$0xff] }
 0x4c9   :  { %2044 = vmatpush1.bf16.msra.mxu1 %v2043_v0  ;;  %v931_v0 = vld [vmem:[#allocation5 + $0x10] sm:$0xff]  ;;  %v1236_v50 = vld [vmem:[#allocation7 + $0x58] sm:$0xff] }
 0x4ca   :  { %2046 = vmatprep.subr.bf16.mxu1 %v2045_v2  ;;  %v935_v2 = vld [vmem:[#allocation5 + $0x30] sm:$0xff] }
 0x4cb   :  { %v2079_v4 = vpack.c.bf16 %v935_v2, %v931_v0  ;;  %v1016_v0 = vld [vmem:[#allocation5 + $0x2b8] sm:$0xff]  ;;  %v2115_v2 = vpack.c.bf16 %v1007_v62, %v1003_v56 }
 0x4cc   :  { %v1240_v56 = vld [vmem:[#allocation7 + $0x78] sm:$0xff] }
 0x4cd   :  { %2048 = vmatpush1.bf16.msra.mxu1 %v2047_v7  ;;  %v948_v7 = vld [vmem:[#allocation5 + $0x98] sm:$0xff] }
 0x4ce   :  { %2050 = vmatprep.subr.bf16.mxu1 %v2049_v9  ;;  %v952_v9 = vld [vmem:[#allocation5 + $0xb8] sm:$0xff] }
 0x4cf   :  { %v2085_v10 = vpack.c.bf16 %v952_v9, %v948_v7  ;;  %v1019_v9 = vld [vmem:[#allocation5 + $0x2d0] sm:$0xff] }
 0x4d1   :  { %2052 = vmatpush1.bf16.msra.mxu1 %v2051_v17  ;;  %v960_v17 = vld [vmem:[#allocation5 + $0xf8] sm:$0xff] }
 0x4d2   :  { %2054 = vmatprep.subr.bf16.mxu1 %v2053_v18  ;;  %v2087_v18 = vpack.c.bf16 %v951_v14, %v947_v15  ;;  %v2089_v19 = vpack.c.bf16 %v960_v17, %v956_v16  ;;  %v1032_v15 = vld [vmem:[#allocation5 + $0x338] sm:$0xff]  ;;  %v1027_v17 = vld [vmem:[#allocation5 + $0x310] sm:$0xff] }
 0x4d5   :  { %2056 = vmatpush1.bf16.msra.mxu1 %v2055_v24  ;;  %v968_v24 = vld [vmem:[#allocation5 + $0x138] sm:$0xff] }
 0x4d6   :  { %2058 = vmatprep.subr.bf16.mxu1 %v2057_v25  ;;  %v2091_v25 = vpack.c.bf16 %v959_v22, %v955_v21  ;;  %v2093_v26 = vpack.c.bf16 %v968_v24, %v964_v23  ;;  %v1040_v21 = vld [vmem:[#allocation5 + $0x378] sm:$0xff]  ;;  %v1035_v24 = vld [vmem:[#allocation5 + $0x350] sm:$0xff] }
 0x4d9   :  { %2060 = vmatpush1.bf16.msra.mxu1 %v2059_v30  ;;  %v976_v30 = vld [vmem:[#allocation5 + $0x178] sm:$0xff] }
 0x4da   :  { %2062 = vmatprep.subr.bf16.mxu1 %v2061_v11  ;;  %v2095_v11 = vpack.c.bf16 %v967_v28, %v963_v27  ;;  %v2097_v31 = vpack.c.bf16 %v976_v30, %v972_v29  ;;  %v1048_v27 = vld [vmem:[#allocation5 + $0x3b8] sm:$0xff]  ;;  %v1043_v30 = vld [vmem:[#allocation5 + $0x390] sm:$0xff] }
 0x4dd   :  { %2064 = vmatpush1.bf16.msra.mxu1 %v2063_v35  ;;  %v984_v35 = vld [vmem:[#allocation5 + $0x1b8] sm:$0xff] }
 0x4de   :  { %2066 = vmatprep.subr.bf16.mxu1 %v2065_v36  ;;  %v2099_v36 = vpack.c.bf16 %v975_v33, %v971_v32  ;;  %v2101_v37 = vpack.c.bf16 %v984_v35, %v980_v34  ;;  %v1056_v32 = vld [vmem:[#allocation5 + $0x3f8] sm:$0xff]  ;;  %v1051_v35 = vld [vmem:[#allocation5 + $0x3d0] sm:$0xff] }
 0x4e1   :  { %2068 = vmatpush1.bf16.msra.mxu1 %v2067_v41  ;;  %v992_v41 = vld [vmem:[#allocation5 + $0x1f8] sm:$0xff] }
 0x4e2   :  { %2070 = vmatprep.subr.bf16.mxu1 %v2069_v42  ;;  %v2103_v42 = vpack.c.bf16 %v983_v39, %v979_v38  ;;  %v2105_v43 = vpack.c.bf16 %v992_v41, %v988_v40  ;;  %v1228_v38 = vld [vmem:[#allocation7 + $0x18] sm:$0xff]  ;;  %v1225_v41 = vld [vmem:[#allocation7] sm:$0xff] }
 0x4e5   :  { %2072 = vmatpush1.bf16.msra.mxu1 %v2071_v47  ;;  %v1000_v47 = vld [vmem:[#allocation5 + $0x238] sm:$0xff] }
 0x4e6   :  { %2074 = vmatprep.subr.bf16.mxu1 %v2073_v49  ;;  %v2109_v49 = vpack.c.bf16 %v1000_v47, %v996_v46  ;;  %v1229_v47 = vld [vmem:[#allocation7 + $0x20] sm:$0xff] }
 0x4e9   :  { %2076 = vmatpush1.bf16.msra.mxu1 %v2075_v55  ;;  %v2113_v55 = vpack.c.bf16 %v1008_v53, %v1004_v52  ;;  %v1233_v53 = vld [vmem:[#allocation7 + $0x40] sm:$0xff] }
 0x4ea   :  { %2078 = vmatprep.subr.bf16.mxu1 %v2077_v63  ;;  %v1012_v63 = vld [vmem:[#allocation5 + $0x298] sm:$0xff] }
 0x4eb   :  { %v2117_v61 = vpack.c.bf16 %v1016_v0, %v1012_v63  ;;  %v1237_v0 = vld [vmem:[#allocation7 + $0x60] sm:$0xff] }
 0x4ec   :  { %1144 = vmatmul.mubr.f32.vlgmr.msra.gmra.mrb[2].mxu1 %v2815_v5 }
 0x4ed   :  { %2080 = vmatpush1.bf16.msra.mxu1 %v2079_v4  ;;  %1214 = vmatprep.mubr.f32.mxu1 %v2806_v20  ;;  %v1015_v4 = vld [vmem:[#allocation5 + $0x2b0] sm:$0xff] }
 0x4ee   :  { %2082 = vmatprep.subr.bf16.mxu1 %v2081_v13  ;;  %v1020_v13 = vld [vmem:[#allocation5 + $0x2d8] sm:$0xff]  ;;  %v2119_v6 = vpack.c.bf16 %v1015_v4, %v1011_v3 }
 0x4ef   :  { %v2121_v7 = vpack.c.bf16 %v1024_v59, %v1020_v13  ;;  %v1244_v3 = vld [vmem:[#allocation7 + $0x98] sm:$0xff]  ;;  %v1241_v59 = vld [vmem:[#allocation7 + $0x80] sm:$0xff] }
 0x4f1   :  { %2084 = vmatpush1.bf16.msra.mxu1 %v2083_v1  ;;  %v1023_v1 = vld [vmem:[#allocation5 + $0x2f0] sm:$0xff] }
 0x4f2   :  { %2086 = vmatprep.subr.bf16.mxu1 %v2085_v10  ;;  %v1028_v10 = vld [vmem:[#allocation5 + $0x318] sm:$0xff]  ;;  %v2123_v14 = vpack.c.bf16 %v1023_v1, %v1019_v9 }
 0x4f3   :  { %v2125_v16 = vpack.c.bf16 %v1032_v15, %v1028_v10  ;;  %v1248_v9 = vld [vmem:[#allocation7 + $0xb8] sm:$0xff]  ;;  %v1245_v15 = vld [vmem:[#allocation7 + $0xa0] sm:$0xff] }
 0x4f5   :  { %2088 = vmatpush1.bf16.msra.mxu1 %v2087_v18  ;;  %v1031_v18 = vld [vmem:[#allocation5 + $0x330] sm:$0xff] }
 0x4f6   :  { %2090 = vmatprep.subr.bf16.mxu1 %v2089_v19  ;;  %v1036_v19 = vld [vmem:[#allocation5 + $0x358] sm:$0xff]  ;;  %v2127_v22 = vpack.c.bf16 %v1031_v18, %v1027_v17 }
 0x4f7   :  { %v2129_v23 = vpack.c.bf16 %v1040_v21, %v1036_v19  ;;  %v1252_v17 = vld [vmem:[#allocation7 + $0xd8] sm:$0xff]  ;;  %v1249_v21 = vld [vmem:[#allocation7 + $0xc0] sm:$0xff] }
 0x4f9   :  { %2092 = vmatpush1.bf16.msra.mxu1 %v2091_v25  ;;  %v1039_v25 = vld [vmem:[#allocation5 + $0x370] sm:$0xff] }
 0x4fa   :  { %2094 = vmatprep.subr.bf16.mxu1 %v2093_v26  ;;  %v1044_v26 = vld [vmem:[#allocation5 + $0x398] sm:$0xff]  ;;  %v2131_v28 = vpack.c.bf16 %v1039_v25, %v1035_v24 }
 0x4fb   :  { %v2133_v29 = vpack.c.bf16 %v1048_v27, %v1044_v26  ;;  %v1256_v24 = vld [vmem:[#allocation7 + $0xf8] sm:$0xff]  ;;  %v1253_v27 = vld [vmem:[#allocation7 + $0xe0] sm:$0xff] }
 0x4fd   :  { %2096 = vmatpush1.bf16.msra.mxu1 %v2095_v11  ;;  %v1047_v11 = vld [vmem:[#allocation5 + $0x3b0] sm:$0xff] }
 0x4fe   :  { %2098 = vmatprep.subr.bf16.mxu1 %v2097_v31  ;;  %v1052_v31 = vld [vmem:[#allocation5 + $0x3d8] sm:$0xff]  ;;  %v2135_v33 = vpack.c.bf16 %v1047_v11, %v1043_v30 }
 0x4ff   :  { %v2137_v34 = vpack.c.bf16 %v1056_v32, %v1052_v31  ;;  %v1260_v30 = vld [vmem:[#allocation7 + $0x118] sm:$0xff]  ;;  %v1257_v32 = vld [vmem:[#allocation7 + $0x100] sm:$0xff] }
 0x501   :  { %2100 = vmatpush1.bf16.msra.mxu1 %v2099_v36  ;;  %v1055_v36 = vld [vmem:[#allocation5 + $0x3f0] sm:$0xff] }
 0x502   :  { %2102 = vmatprep.subr.bf16.mxu1 %v2101_v37  ;;  %v1226_v37 = vld [vmem:[#allocation7 + $0x8] sm:$0xff]  ;;  %v2139_v39 = vpack.c.bf16 %v1055_v36, %v1051_v35  ;;  %v1264_v35 = vld [vmem:[#allocation7 + $0x138] sm:$0xff] }
 0x503   :  { %v2141_v40 = vpack.c.bf16 %v1228_v38, %v1226_v37  ;;  %v1261_v38 = vld [vmem:[#allocation7 + $0x120] sm:$0xff] }
 0x505   :  { %2104 = vmatpush1.bf16.msra.mxu1 %v2103_v42  ;;  %v1227_v42 = vld [vmem:[#allocation7 + $0x10] sm:$0xff] }
 0x506   :  { %2106 = vmatprep.subr.bf16.mxu1 %v2105_v43  ;;  %v1230_v43 = vld [vmem:[#allocation7 + $0x28] sm:$0xff]  ;;  %v2143_v45 = vpack.c.bf16 %v1227_v42, %v1225_v41  ;;  %v1268_v41 = vld [vmem:[#allocation7 + $0x158] sm:$0xff] }
 0x507   :  { %v2145_v46 = vpack.c.bf16 %v1232_v44, %v1230_v43  ;;  %v1265_v44 = vld [vmem:[#allocation7 + $0x140] sm:$0xff] }
 0x509   :  { %2108 = vmatpush1.bf16.msra.mxu1 %v2107_v48  ;;  %v1231_v48 = vld [vmem:[#allocation7 + $0x30] sm:$0xff] }
 0x50a   :  { %2110 = vmatprep.subr.bf16.mxu1 %v2109_v49  ;;  %v1234_v49 = vld [vmem:[#allocation7 + $0x48] sm:$0xff]  ;;  %v2147_v51 = vpack.c.bf16 %v1231_v48, %v1229_v47  ;;  %v1272_v47 = vld [vmem:[#allocation7 + $0x178] sm:$0xff] }
 0x50b   :  { %v2149_v52 = vpack.c.bf16 %v1236_v50, %v1234_v49  ;;  %v1269_v50 = vld [vmem:[#allocation7 + $0x160] sm:$0xff] }
 0x50d   :  { %2112 = vmatpush1.bf16.msra.mxu1 %v2111_v54  ;;  %v1235_v54 = vld [vmem:[#allocation7 + $0x50] sm:$0xff] }
 0x50e   :  { %2114 = vmatprep.subr.bf16.mxu1 %v2113_v55  ;;  %v1238_v55 = vld [vmem:[#allocation7 + $0x68] sm:$0xff]  ;;  %v2151_v62 = vpack.c.bf16 %v1235_v54, %v1233_v53  ;;  %v1276_v53 = vld [vmem:[#allocation7 + $0x198] sm:$0xff] }
 0x50f   :  { %v2153_v63 = vpack.c.bf16 %v1240_v56, %v1238_v55  ;;  %v1273_v56 = vld [vmem:[#allocation7 + $0x180] sm:$0xff] }
 0x511   :  { %2116 = vmatpush1.bf16.msra.mxu1 %v2115_v2  ;;  %v1239_v2 = vld [vmem:[#allocation7 + $0x70] sm:$0xff] }
 0x512   :  { %2118 = vmatprep.subr.bf16.mxu1 %v2117_v61  ;;  %v1242_v61 = vld [vmem:[#allocation7 + $0x88] sm:$0xff]  ;;  %v2155_v4 = vpack.c.bf16 %v1239_v2, %v1237_v0  ;;  %v1280_v0 = vld [vmem:[#allocation7 + $0x1b8] sm:$0xff] }
 0x513   :  { %v2157_v13 = vpack.c.bf16 %v1244_v3, %v1242_v61  ;;  %v1277_v3 = vld [vmem:[#allocation7 + $0x1a0] sm:$0xff] }
 0x515   :  { %2120 = vmatpush1.bf16.msra.mxu1 %v2119_v6  ;;  %v1243_v6 = vld [vmem:[#allocation7 + $0x90] sm:$0xff] }
 0x516   :  { %2122 = vmatprep.subr.bf16.mxu1 %v2121_v7  ;;  %v1246_v7 = vld [vmem:[#allocation7 + $0xa8] sm:$0xff]  ;;  %v2159_v1 = vpack.c.bf16 %v1243_v6, %v1241_v59  ;;  %v1284_v59 = vld [vmem:[#allocation7 + $0x1d8] sm:$0xff] }
 0x517   :  { %v2161_v10 = vpack.c.bf16 %v1248_v9, %v1246_v7  ;;  %v1281_v9 = vld [vmem:[#allocation7 + $0x1c0] sm:$0xff] }
 0x519   :  { %2124 = vmatpush1.bf16.msra.mxu1 %v2123_v14  ;;  %v1247_v14 = vld [vmem:[#allocation7 + $0xb0] sm:$0xff] }
 0x51a   :  { %2126 = vmatprep.subr.bf16.mxu1 %v2125_v16  ;;  %v1250_v16 = vld [vmem:[#allocation7 + $0xc8] sm:$0xff]  ;;  %v2163_v18 = vpack.c.bf16 %v1247_v14, %v1245_v15  ;;  %v1288_v15 = vld [vmem:[#allocation7 + $0x1f8] sm:$0xff] }
 0x51b   :  { %v2165_v19 = vpack.c.bf16 %v1252_v17, %v1250_v16  ;;  %v1285_v17 = vld [vmem:[#allocation7 + $0x1e0] sm:$0xff] }
 0x51d   :  { %2128 = vmatpush1.bf16.msra.mxu1 %v2127_v22  ;;  %v1251_v22 = vld [vmem:[#allocation7 + $0xd0] sm:$0xff] }
 0x51e   :  { %2130 = vmatprep.subr.bf16.mxu1 %v2129_v23  ;;  %v1254_v23 = vld [vmem:[#allocation7 + $0xe8] sm:$0xff]  ;;  %v2167_v25 = vpack.c.bf16 %v1251_v22, %v1249_v21  ;;  %v1292_v21 = vld [vmem:[#allocation7 + $0x218] sm:$0xff] }
 0x51f   :  { %v2169_v26 = vpack.c.bf16 %v1256_v24, %v1254_v23 }
 0x521   :  { %2132 = vmatpush1.bf16.msra.mxu1 %v2131_v28  ;;  %v1255_v28 = vld [vmem:[#allocation7 + $0xf0] sm:$0xff] }
 0x522   :  { %2134 = vmatprep.subr.bf16.mxu1 %v2133_v29  ;;  %v1258_v29 = vld [vmem:[#allocation7 + $0x108] sm:$0xff]  ;;  %v2171_v11 = vpack.c.bf16 %v1255_v28, %v1253_v27 }
 0x523   :  { %v2173_v31 = vpack.c.bf16 %v1260_v30, %v1258_v29 }
 0x525   :  { %2136 = vmatpush1.bf16.msra.mxu1 %v2135_v33  ;;  %v1259_v33 = vld [vmem:[#allocation7 + $0x110] sm:$0xff] }
 0x526   :  { %2138 = vmatprep.subr.bf16.mxu1 %v2137_v34  ;;  %v1262_v34 = vld [vmem:[#allocation7 + $0x128] sm:$0xff]  ;;  %v2175_v36 = vpack.c.bf16 %v1259_v33, %v1257_v32  ;;  %v1291_v32 = vld [vmem:[#allocation7 + $0x210] sm:$0xff] }
 0x527   :  { %v2177_v37 = vpack.c.bf16 %v1264_v35, %v1262_v34  ;;  %v1294_v34 = vld [vmem:[#allocation7 + $0x228] sm:$0xff]  ;;  %v1296_v35 = vld [vmem:[#allocation7 + $0x238] sm:$0xff] }
 0x529   :  { %2140 = vmatpush1.bf16.msra.mxu1 %v2139_v39  ;;  %v1263_v39 = vld [vmem:[#allocation7 + $0x130] sm:$0xff] }
 0x52a   :  { %2142 = vmatprep.subr.bf16.mxu1 %v2141_v40  ;;  %v1266_v40 = vld [vmem:[#allocation7 + $0x148] sm:$0xff]  ;;  %v2179_v42 = vpack.c.bf16 %v1263_v39, %v1261_v38  ;;  %v2209_v39 = vpack.c.bf16 %v1296_v35, %v1294_v34  ;;  %v1332_v35 = vld [vmem:[#allocation7 + $0x358] sm:$0xff] }
 0x52b   :  { %v2181_v43 = vpack.c.bf16 %v1268_v41, %v1266_v40  ;;  %v1293_v40 = vld [vmem:[#allocation7 + $0x220] sm:$0xff]  ;;  %v1295_v41 = vld [vmem:[#allocation7 + $0x230] sm:$0xff]  ;;  %v1330_v34 = vld [vmem:[#allocation7 + $0x348] sm:$0xff] }
 0x52c   :  { %1215 = vmatmul.mubr.f32.vlgmr.msra.gmra.mrb[4].mxu1 %v2815_v5 }
 0x52d   :  { %2144 = vmatpush1.bf16.msra.mxu1 %v2143_v45  ;;  %v1267_v45 = vld [vmem:[#allocation7 + $0x150] sm:$0xff] }
 0x52e   :  { %2146 = vmatprep.subr.bf16.mxu1 %v2145_v46  ;;  %v1270_v46 = vld [vmem:[#allocation7 + $0x168] sm:$0xff]  ;;  %v2183_v48 = vpack.c.bf16 %v1267_v45, %v1265_v44  ;;  %v2211_v44 = vpack.c.bf16 %v1295_v41, %v1293_v40  ;;  %v1336_v41 = vld [vmem:[#allocation7 + $0x378] sm:$0xff] }
 0x52f   :  { %v2185_v49 = vpack.c.bf16 %v1272_v47, %v1270_v46  ;;  %v1297_v46 = vld [vmem:[#allocation7 + $0x240] sm:$0xff]  ;;  %v1299_v47 = vld [vmem:[#allocation7 + $0x250] sm:$0xff]  ;;  %v1334_v40 = vld [vmem:[#allocation7 + $0x368] sm:$0xff] }
 0x531   :  { %2148 = vmatpush1.bf16.msra.mxu1 %v2147_v51  ;;  %v1271_v51 = vld [vmem:[#allocation7 + $0x170] sm:$0xff] }
 0x532   :  { %2150 = vmatprep.subr.bf16.mxu1 %v2149_v52  ;;  %v1274_v52 = vld [vmem:[#allocation7 + $0x188] sm:$0xff]  ;;  %v2187_v54 = vpack.c.bf16 %v1271_v51, %v1269_v50  ;;  %v2215_v50 = vpack.c.bf16 %v1299_v47, %v1297_v46  ;;  %v1340_v47 = vld [vmem:[#allocation7 + $0x398] sm:$0xff] }
 0x533   :  { %v2189_v55 = vpack.c.bf16 %v1276_v53, %v1274_v52  ;;  %v1301_v52 = vld [vmem:[#allocation7 + $0x260] sm:$0xff]  ;;  %v1303_v53 = vld [vmem:[#allocation7 + $0x270] sm:$0xff]  ;;  %v1338_v46 = vld [vmem:[#allocation7 + $0x388] sm:$0xff] }
 0x535   :  { %2152 = vmatpush1.bf16.msra.mxu1 %v2151_v62  ;;  %v1275_v62 = vld [vmem:[#allocation7 + $0x190] sm:$0xff] }
 0x536   :  { %2154 = vmatprep.subr.bf16.mxu1 %v2153_v63  ;;  %v1278_v63 = vld [vmem:[#allocation7 + $0x1a8] sm:$0xff]  ;;  %v2191_v2 = vpack.c.bf16 %v1275_v62, %v1273_v56  ;;  %v2219_v56 = vpack.c.bf16 %v1303_v53, %v1301_v52  ;;  %v1344_v53 = vld [vmem:[#allocation7 + $0x3b8] sm:$0xff] }
 0x537   :  { %v2193_v61 = vpack.c.bf16 %v1280_v0, %v1278_v63  ;;  %v1305_v63 = vld [vmem:[#allocation7 + $0x280] sm:$0xff]  ;;  %v1307_v0 = vld [vmem:[#allocation7 + $0x290] sm:$0xff]  ;;  %v1342_v52 = vld [vmem:[#allocation7 + $0x3a8] sm:$0xff] }
 0x539   :  { %2156 = vmatpush1.bf16.msra.mxu1 %v2155_v4  ;;  %v1279_v4 = vld [vmem:[#allocation7 + $0x1b0] sm:$0xff] }
 0x53a   :  { %2158 = vmatprep.subr.bf16.mxu1 %v2157_v13  ;;  %v1282_v13 = vld [vmem:[#allocation7 + $0x1c8] sm:$0xff]  ;;  %v2195_v6 = vpack.c.bf16 %v1279_v4, %v1277_v3  ;;  %v2223_v3 = vpack.c.bf16 %v1307_v0, %v1305_v63  ;;  %v1348_v0 = vld [vmem:[#allocation7 + $0x3d8] sm:$0xff] }
 0x53b   :  { %v2197_v7 = vpack.c.bf16 %v1284_v59, %v1282_v13  ;;  %v1309_v13 = vld [vmem:[#allocation7 + $0x2a0] sm:$0xff]  ;;  %v1311_v59 = vld [vmem:[#allocation7 + $0x2b0] sm:$0xff]  ;;  %v1346_v63 = vld [vmem:[#allocation7 + $0x3c8] sm:$0xff] }
 0x53d   :  { %2160 = vmatpush1.bf16.msra.mxu1 %v2159_v1  ;;  %v1283_v1 = vld [vmem:[#allocation7 + $0x1d0] sm:$0xff] }
 0x53e   :  { %2162 = vmatprep.subr.bf16.mxu1 %v2161_v10  ;;  %v1286_v10 = vld [vmem:[#allocation7 + $0x1e8] sm:$0xff]  ;;  %v2199_v14 = vpack.c.bf16 %v1283_v1, %v1281_v9  ;;  %v2227_v9 = vpack.c.bf16 %v1311_v59, %v1309_v13  ;;  %v1347_v13 = vld [vmem:[#allocation7 + $0x3d0] sm:$0xff]  ;;  %v1073_v59 = vsub.s32 3, %v2705_v57 }
 0x53f   :  { %v2201_v16 = vpack.c.bf16 %v1288_v15, %v1286_v10  ;;  %v1313_v10 = vld [vmem:[#allocation7 + $0x2c0] sm:$0xff]  ;;  %v1315_v15 = vld [vmem:[#allocation7 + $0x2d0] sm:$0xff] }
 0x541   :  { %2164 = vmatpush1.bf16.msra.mxu1 %v2163_v18  ;;  %v1287_v18 = vld [vmem:[#allocation7 + $0x1f0] sm:$0xff] }
 0x542   :  { %2166 = vmatprep.subr.bf16.mxu1 %v2165_v19  ;;  %v1290_v19 = vld [vmem:[#allocation7 + $0x208] sm:$0xff]  ;;  %v2203_v22 = vpack.c.bf16 %v1287_v18, %v1285_v17  ;;  %v2231_v17 = vpack.c.bf16 %v1315_v15, %v1313_v10  ;;  %v1349_v15 = vld [vmem:[#allocation7 + $0x3e0] sm:$0xff] }
 0x543   :  { %v2205_v23 = vpack.c.bf16 %v1292_v21, %v1290_v19  ;;  %v1317_v19 = vld [vmem:[#allocation7 + $0x2e0] sm:$0xff]  ;;  %v1319_v21 = vld [vmem:[#allocation7 + $0x2f0] sm:$0xff] }
 0x545   :  { %2168 = vmatpush1.bf16.msra.mxu1 %v2167_v25 }
 0x546   :  { %2170 = vmatprep.subr.bf16.mxu1 %v2169_v26  ;;  %v2826_v26 = vld [vmem:[%s2900_s9] sm:$0xf] }
 0x547   :  { %v1062_v27 = vrot.slane %v2826_v26, %v2708_v58  ;;  %v1066_v28 = vrot.slane %v2826_v26, %v2714_v60 }
 0x549   :  { %2172 = vmatpush1.bf16.msra.mxu1 %v2171_v11 }
 0x54a   :  { %2174 = vmatprep.subr.bf16.mxu1 %v2173_v31  ;;  %v1289_v31 = vld [vmem:[#allocation7 + $0x200] sm:$0xff] }
 0x54d   :  { %2176 = vmatpush1.bf16.msra.mxu1 %v2175_v36 }
 0x54e   :  { %2178 = vmatprep.subr.bf16.mxu1 %v2177_v37  ;;  %v2207_v37 = vpack.c.bf16 %v1291_v32, %v1289_v31  ;;  %v1325_v32 = vld [vmem:[#allocation7 + $0x320] sm:$0xff] }
 0x551   :  { %2180 = vmatpush1.bf16.msra.mxu1 %v2179_v42  ;;  %v1298_v42 = vld [vmem:[#allocation7 + $0x248] sm:$0xff] }
 0x552   :  { %2182 = vmatprep.subr.bf16.mxu1 %v2181_v43  ;;  %v1300_v43 = vld [vmem:[#allocation7 + $0x258] sm:$0xff] }
 0x553   :  { %v2213_v45 = vpack.c.bf16 %v1300_v43, %v1298_v42  ;;  %v2249_v43 = vpack.c.bf16 %v1336_v41, %v1334_v40 }
 0x555   :  { %2184 = vmatpush1.bf16.msra.mxu1 %v2183_v48  ;;  %v1302_v48 = vld [vmem:[#allocation7 + $0x268] sm:$0xff] }
 0x556   :  { %2186 = vmatprep.subr.bf16.mxu1 %v2185_v49  ;;  %v1304_v49 = vld [vmem:[#allocation7 + $0x278] sm:$0xff] }
 0x557   :  { %v2217_v51 = vpack.c.bf16 %v1304_v49, %v1302_v48  ;;  %v2253_v49 = vpack.c.bf16 %v1340_v47, %v1338_v46 }
 0x559   :  { %2188 = vmatpush1.bf16.msra.mxu1 %v2187_v54  ;;  %v1306_v54 = vld [vmem:[#allocation7 + $0x288] sm:$0xff] }
 0x55a   :  { %2190 = vmatprep.subr.bf16.mxu1 %v2189_v55  ;;  %v1308_v55 = vld [vmem:[#allocation7 + $0x298] sm:$0xff] }
 0x55b   :  { %v2221_v62 = vpack.c.bf16 %v1308_v55, %v1306_v54  ;;  %v2257_v55 = vpack.c.bf16 %v1344_v53, %v1342_v52 }
 0x55d   :  { %2192 = vmatpush1.bf16.msra.mxu1 %v2191_v2  ;;  %v1310_v2 = vld [vmem:[#allocation7 + $0x2a8] sm:$0xff] }
 0x55e   :  { %2194 = vmatprep.subr.bf16.mxu1 %v2193_v61  ;;  %v1312_v61 = vld [vmem:[#allocation7 + $0x2b8] sm:$0xff] }
 0x55f   :  { %v2225_v4 = vpack.c.bf16 %v1312_v61, %v1310_v2  ;;  %v2261_v61 = vpack.c.bf16 %v1348_v0, %v1346_v63 }
 0x561   :  { %2196 = vmatpush1.bf16.msra.mxu1 %v2195_v6  ;;  %v1314_v6 = vld [vmem:[#allocation7 + $0x2c8] sm:$0xff] }
 0x562   :  { %2198 = vmatprep.subr.bf16.mxu1 %v2197_v7  ;;  %v1316_v7 = vld [vmem:[#allocation7 + $0x2d8] sm:$0xff] }
 0x563   :  { %v2229_v1 = vpack.c.bf16 %v1316_v7, %v1314_v6  ;;  %v1350_v6 = vld [vmem:[#allocation7 + $0x3e8] sm:$0xff]  ;;  %v1352_v7 = vld [vmem:[#allocation7 + $0x3f8] sm:$0xff] }
 0x564   :  { %v2265_v10 = vpack.c.bf16 %v1352_v7, %v1350_v6 }
 0x565   :  { %2200 = vmatpush1.bf16.msra.mxu1 %v2199_v14  ;;  %v1318_v14 = vld [vmem:[#allocation7 + $0x2e8] sm:$0xff] }
 0x566   :  { %2202 = vmatprep.subr.bf16.mxu1 %v2201_v16  ;;  %v1320_v16 = vld [vmem:[#allocation7 + $0x2f8] sm:$0xff] }
 0x567   :  { %v2233_v18 = vpack.c.bf16 %v1320_v16, %v1318_v14  ;;  %v1351_v14 = vld [vmem:[#allocation7 + $0x3f0] sm:$0xff]  ;;  %v1074_v16 = vrot.slane %v2826_v26, %v1073_v59 }
 0x569   :  { %2204 = vmatpush1.bf16.msra.mxu1 %v2203_v22  ;;  %v1322_v22 = vld [vmem:[#allocation7 + $0x308] sm:$0xff] }
 0x56a   :  { %2206 = vmatprep.subr.bf16.mxu1 %v2205_v23  ;;  %v1324_v23 = vld [vmem:[#allocation7 + $0x318] sm:$0xff] }
 0x57f   :  { %v878_v24 = vpop.f32.mrb[0].mxu1 }
 0x580   :  { %883 = vst.msk [vmem:[%s2905_s14] sm:$0xff] %vm882_vm4, %v878_v24  ;;  %v1700_v25 = vpop.f32.mrb[1].mxu1  ;;  %v2235_v24 = vpack.c.bf16 %v1319_v21, %v1317_v19 }
 0x581   :  { %v2237_v25 = vpack.c.bf16 %v1324_v23, %v1322_v22 }
 0x5bf   :  { %v1145_v29 = vpop.f32.mrb[2].mxu1 }
 0x5c0   :  { %v1146_v30 = vadd.f32 %v1145_v29, %v1062_v27  ;;  %v1147_v11 = vpop.f32.mrb[3].mxu1  ;;  %v1321_v27 = vld [vmem:[#allocation7 + $0x300] sm:$0xff]  ;;  %v1326_v29 = vld [vmem:[#allocation7 + $0x328] sm:$0xff] }
 0x5c1   :  { %v1148_v33 = vadd.f32 %v1147_v11, %v1066_v28  ;;  %v1323_v28 = vld [vmem:[#allocation7 + $0x310] sm:$0xff] }
 0x5c2   :  { %v1221_v38 = vmax.f32 %v1146_v30, 0.0  ;;  %v1328_v30 = vld [vmem:[#allocation7 + $0x338] sm:$0xff]  ;;  %v2239_v11 = vpack.c.bf16 %v1323_v28, %v1321_v27 }
 0x5c3   :  { %v1222_v36 = vmax.f32 %v1148_v33, 0.0  ;;  %v2241_v31 = vpack.c.bf16 %v1328_v30, %v1326_v29  ;;  %v1327_v33 = vld [vmem:[#allocation7 + $0x330] sm:$0xff] }
 0x5c5   :  { %1429 = vmatprep.mubr.f32.mxu1 %v1222_v36  ;;  %v2243_v36 = vpack.c.bf16 %v1327_v33, %v1325_v32  ;;  %v767_v33 = vsub.f32 %v2721_v8, %v2726_v12  ;;  %v1509_v8 = vld [vmem:[%s2903_s12] sm:$0x3]  ;;  %s2456_s12 = smov [#allocation8]  }
 0x5c6   :  { %1430 = vmatmul.mubr.f32.vlgmr.msra.gmra.mrb[6].mxu1 %v1221_v38  ;;  %v1329_v38 = vld [vmem:[#allocation7 + $0x340] sm:$0xff]  ;;  %v1535_v46 = vrot.slane %v1509_v8, %v2714_v60 }
 0x5c7   :  { %2208 = vmatpush1.bf16.msra.mxu1 %v2207_v37  ;;  %v2245_v37 = vpack.c.bf16 %v1332_v35, %v1330_v34  ;;  %v768_v34 = vmul.f32 1.442695, %v767_v33  ;;  %v1510_v12 = vld [vmem:[%s2904_s13] sm:$0x3]  ;;  %s1572_s13 = sshll.u32 %s2456_s12, 4  ;;  %s1573_s13 = int_to_ptr.vmem [resolvable:$true] %s1572_s13 }
 0x5c8   :  { %2210 = vmatprep.subr.bf16.mxu1 %v2209_v39  ;;  %v1331_v39 = vld [vmem:[#allocation7 + $0x350] sm:$0xff]  ;;  %v1548_v52 = vrot.slane %v1510_v12, %v2714_v60  ;;  %s2371_s3 = scalar_lea.vmem %s1573_s13, 128  ;;  %p2376_p11 = scmp.lt.s32.totalorder %s1573_s13, %s1573_s13 }
 0x5c9   :  { %v2247_v42 = vpack.c.bf16 %v1331_v39, %v1329_v38  ;;  %2297 = vpow2.f32 %v768_v34  ;;  %p2372_p10 = scmp.ne.s32.totalorder %s1573_s13, %s2371_s3  ;;  %p2377_p12 = scmp.lt.s32.totalorder %s2371_s3, %s2371_s3 }
 0x5cb   :  { %2212 = vmatpush1.bf16.msra.mxu1 %v2211_v44  ;;  %v1333_v44 = vld [vmem:[#allocation7 + $0x360] sm:$0xff]  ;;  %p2378_p13 = por %p2377_p12, %p2376_p11 }
 0x5cc   :  { %2214 = vmatprep.subr.bf16.mxu1 %v2213_v45  ;;  %v1335_v45 = vld [vmem:[#allocation7 + $0x370] sm:$0xff] }
 0x5cd   :  { %v2251_v48 = vpack.c.bf16 %v1335_v45, %v1333_v44  ;;  %v1531_v45 = vrot.slane %v1509_v8, %v2708_v58  ;;  %p2379_p0 = pnand %p2378_p13, %p2372_p10 }
 0x5cf   :  { %2216 = vmatpush1.bf16.msra.mxu1 %v2215_v50  ;;  %v1337_v50 = vld [vmem:[#allocation7 + $0x380] sm:$0xff] }
 0x5d0   :  { %2218 = vmatprep.subr.bf16.mxu1 %v2217_v51  ;;  %v1339_v51 = vld [vmem:[#allocation7 + $0x390] sm:$0xff] }
 0x5d1   :  { %v2255_v54 = vpack.c.bf16 %v1339_v51, %v1337_v50  ;;  %v1544_v51 = vrot.slane %v1510_v12, %v2708_v58 }
 0x5d3   :  { %2220 = vmatpush1.bf16.msra.mxu1 %v2219_v56  ;;  %v1341_v56 = vld [vmem:[#allocation7 + $0x3a0] sm:$0xff] }
 0x5d4   :  { %2222 = vmatprep.subr.bf16.mxu1 %v2221_v62  ;;  %v1343_v62 = vld [vmem:[#allocation7 + $0x3b0] sm:$0xff] }
 0x5d5   :  { %v2259_v2 = vpack.c.bf16 %v1343_v62, %v1341_v56 }
 0x5d7   :  { %2224 = vmatpush1.bf16.msra.mxu1 %v2223_v3  ;;  %v1069_v3 = vsub.s32 2, %v2705_v57 }
 0x5d8   :  { %2226 = vmatprep.subr.bf16.mxu1 %v2225_v4  ;;  %v1345_v4 = vld [vmem:[#allocation7 + $0x3c0] sm:$0xff] }
 0x5db   :  { %2228 = vmatpush1.bf16.msra.mxu1 %v2227_v9  ;;  %v2263_v9 = vpack.c.bf16 %v1347_v13, %v1345_v4 }
 0x5dc   :  { %2230 = vmatprep.subr.bf16.mxu1 %v2229_v1  ;;  %v1070_v1 = vrot.slane %v2826_v26, %v1069_v3 }
 0x5df   :  { %2232 = vmatpush1.bf16.msra.mxu1 %v2231_v17 }
 0x5e0   :  { %2234 = vmatprep.subr.bf16.mxu1 %v2233_v18  ;;  %v2267_v18 = vpack.c.bf16 %v1351_v14, %v1349_v15 }
 0x5e3   :  { %2236 = vmatpush1.bf16.msra.mxu1 %v2235_v24  ;;  %v1353_v24 = vld [vmem:[%s2902_s11] sm:$0x3] }
 0x5e4   :  { %2238 = vmatprep.subr.bf16.mxu1 %v2237_v25  ;;  %v1358_v25 = vrot.slane %v1353_v24, %v2708_v58  ;;  %v1362_v26 = vrot.slane %v1353_v24, %v2714_v60 }
 0x5e7   :  { %2240 = vmatpush1.bf16.msra.mxu1 %v2239_v11 }
 0x5e8   :  { %2242 = vmatprep.subr.bf16.mxu1 %v2241_v31 }
 0x5eb   :  { %2244 = vmatpush1.bf16.msra.mxu1 %v2243_v36 }
 0x5ec   :  { %2246 = vmatprep.subr.bf16.mxu1 %v2245_v37 }
 0x5ef   :  { %2248 = vmatpush1.bf16.msra.mxu1 %v2247_v42  ;;  %v2298_v42 = vpop.eup %2297 }
 0x5f0   :  { %2250 = vmatprep.subr.bf16.mxu1 %v2249_v43 }
 0x5f3   :  { %2252 = vmatpush1.bf16.msra.mxu1 %v2251_v48 }
 0x5f4   :  { %2254 = vmatprep.subr.bf16.mxu1 %v2253_v49 }
 0x5f7   :  { %2256 = vmatpush1.bf16.msra.mxu1 %v2255_v54 }
 0x5f8   :  { %2258 = vmatprep.subr.bf16.mxu1 %v2257_v55 }
 0x5fb   :  { %2260 = vmatpush1.bf16.msra.mxu1 %v2259_v2 }
 0x5fc   :  { %2262 = vmatprep.subr.bf16.mxu1 %v2261_v61 }
 0x5ff   :  { %v1216_v17 = vpop.f32.mrb[4].mxu1  ;;  %2264 = vmatpush1.bf16.msra.mxu1 %v2263_v9 }
 0x600   :  { %v1217_v19 = vadd.f32 %v1216_v17, %v1070_v1  ;;  %v1218_v21 = vpop.f32.mrb[5].mxu1  ;;  %2266 = vmatprep.subr.bf16.mxu1 %v2265_v10 }
 0x601   :  { %v1219_v22 = vadd.f32 %v1218_v21, %v1074_v16 }
 0x602   :  { %v1223_v23 = vmax.f32 %v1217_v19, 0.0 }
 0x603   :  { %v1224_v57 = vmax.f32 %v1219_v22, 0.0  ;;  %2268 = vmatpush1.bf16.msra.mxu1 %v2267_v18 }
 0x605   :  { %1500 = vmatprep.mubr.f32.mxu1 %v1224_v57 }
 0x606   :  { %1501 = vmatmul.mubr.f32.vlgmr.msra.gmra.mrb[6].mxu1 %v1223_v23 }
 0x6d9   :  { %v1502_v27 = vpop.f32.mrb[6].mxu1 }
 0x6da   :  { %v2271_v28 = vadd.f32 %v1502_v27, %v1358_v25  ;;  %v1504_v29 = vpop.f32.mrb[7].mxu1 }
 0x6db   :  { %v2272_v30 = vadd.f32 %v1504_v29, %v1362_v26 }
 0x6dc   :  { %v1507_v11 = vadd.f32 %v2271_v28, %v2815_v5 }
 0x6dd   :  { %v1508_v31 = vadd.f32 %v2272_v30, %v2806_v20 }
 0x6df   :  { %v1511_v32 = vadd.f32 %v1508_v31, %v1507_v11 }
 0x6e1   :  { %1512 = vadd.xlane.f32.xlu1 %v1511_v32 }
 0x76e   :  { %v1513_v35 = vpop.xlane.xlu1 %1512 }
 0x76f   :  { %v1514_v36 = vmul.f32 0.00390625, %v1513_v35 }
 0x771   :  { %v1515_v37 = vsub.f32 %v1507_v11, %v1514_v36  ;;  %v1516_v38 = vsub.f32 %v1508_v31, %v1514_v36 }
 0x773   :  { %v1517_v39 = vmul.f32 %v1515_v37, %v1515_v37  ;;  %v1518_v40 = vmul.f32 %v1516_v38, %v1516_v38 }
 0x775   :  { %v1519_v41 = vadd.f32 %v1518_v40, %v1517_v39 }
 0x777   :  { %1520 = vadd.xlane.f32.xlu0 %v1519_v41 }
 0x77b   :  { %770 = vadd.xlane.f32.xlu0 %v2298_v42 }
 0x804   :  { %v1521_v5 = vpop.xlane.xlu0 %1520 }
 0x805   :  { %v1522_v43 = vmul.f32 0.00390625, %v1521_v5 }
 0x807   :  { %v1523_v20 = vadd.f32 1e-05, %v1522_v43 }
 0x808   :  { %v771_v44 = vpop.xlane.xlu0 %770 }
 0x809   :  { %2299 = vrsqrt.f32 %v1523_v20 }
 0x80a   :  { %2301 = vrcp.f32 %v771_v44 }
 0x813   :  { %v2300_v47 = vpop.eup %2299 }
 0x814   :  { %v2302_v48 = vpop.eup %2301  ;;  %v1525_v49 = vmul.f32 %v2300_v47, %v1515_v37  ;;  %v1526_v50 = vmul.f32 %v2300_v47, %v1516_v38 }
 0x815   :  { %v773_v53 = vmul.f32 %v2302_v48, %v2298_v42 }
 0x816   :  { %v1538_v54 = vmul.f32 %v1531_v45, %v1525_v49  ;;  %v1539_v55 = vmul.f32 %v1535_v46, %v1526_v50 }
 0x817   :  { %774 = vst [vmem:[#allocation8] sm:$0xff] %v773_v53 }
 0x818   :  { %v1551_v56 = vadd.f32 %v1544_v51, %v1538_v54  ;;  %v1552_v62 = vadd.f32 %v1548_v52, %v1539_v55 }
 0x81a   :  { %v1553_v63 = vmul.f32 %v1551_v56, %v1551_v56  ;;  %v1554_v0 = vmul.f32 %v1552_v62, %v1552_v62 }
 0x81c   :  { %v1555_v2 = vadd.f32 %v1554_v0, %v1553_v63 }
 0x81e   :  { %1556 = vadd.xlane.f32.xlu1 %v1555_v2 }
 0x81f   :  { %2382 = shalt.err (!%p2379_p0)
}
 0x820   :  { %s2383_s0 = scalar_lea.hbm %s2906_s15, 128 }
 0x821   :  { %p2384_p1 = scmp.ne.s32.totalorder %s2906_s15, %s2383_s0  ;;  %p2387_p2 = scmp.lt.u32.totalorder %s2383_s0, %s2906_s15 }
 0x823   :  { %p2389_p3 = pnand %p2387_p2, %p2384_p1 }
 0x825   :  { %2392 = shalt.err (!%p2389_p3)
}
 0x826   :  { %1575 = dma.vmem_to_hbm [thread:$0]  %s1573_s13, 128, %s2906_s15, [#allocation4]  }
 0x827   :  { %s2457_s19 = smov [#allocation9]   ;;  %s2458_s25 = smov [#allocation11]  }
 0x828   :  { %s1582_s8 = sshll.u32 %s2457_s19, 4  ;;  %s1592_s1 = sshll.u32 %s2458_s25, 4  ;;  %s1583_s8 = int_to_ptr.vmem [resolvable:$true] %s1582_s8  ;;  %s1593_s1 = int_to_ptr.vmem [resolvable:$true] %s1592_s1 }
 0x829   :  { %s2393_s20 = scalar_lea.vmem %s1583_s8, 256  ;;  %p2398_p5 = scmp.lt.s32.totalorder %s1583_s8, %s1583_s8 }
 0x82a   :  { %p2394_p4 = scmp.ne.s32.totalorder %s1583_s8, %s2393_s20  ;;  %p2399_p6 = scmp.lt.s32.totalorder %s2393_s20, %s2393_s20 }
 0x82c   :  { %p2400_p7 = por %p2399_p6, %p2398_p5 }
 0x82e   :  { %p2401_p8 = pnand %p2400_p7, %p2394_p4 }
 0x8ab   :  { %v1557_v58 = vpop.xlane.xlu1 %1556 }
 0x8ac   :  { %v1558_v60 = vmax.f32 %v1557_v58, 1e-24 }
 0x8ae   :  { %2303 = vrsqrt.f32 %v1558_v60 }
 0x8b8   :  { %v2304_v61 = vpop.eup %2303 }
 0x8b9   :  { %v1560_v3 = vmul.f32 %v2304_v61, %v1551_v56  ;;  %v1561_v4 = vmul.f32 %v2304_v61, %v1552_v62 }
 0x8bb   :  { %1562 = vst [vmem:[#allocation9] sm:$0xff] %v1560_v3  ;;  %1563 = vst [vmem:[#allocation9 + $0x8] sm:$0xff] %v1561_v4 }
 0x8bc   :  { %2404 = shalt.err (!%p2401_p8)
}
 0x8bd   :  { %s2405_s21 = scalar_lea.hbm %s2907_s16, 256 }
 0x8be   :  { %p2406_p9 = scmp.ne.s32.totalorder %s2907_s16, %s2405_s21  ;;  %p2409_p10 = scmp.lt.u32.totalorder %s2405_s21, %s2907_s16 }
 0x8c0   :  { %p2411_p11 = pnand %p2409_p10, %p2406_p9 }
 0x8c2   :  { %2414 = shalt.err (!%p2411_p11)
}
 0x8c3   :  { %1585 = dma.vmem_to_hbm [thread:$0]  %s1583_s8, 256, %s2907_s16, [#allocation10]  }
 0x8c4   :  { %s2415_s11 = scalar_lea.vmem %s1593_s1, 256  ;;  %p2420_p13 = scmp.lt.s32.totalorder %s1593_s1, %s1593_s1 }
 0x8c5   :  { %p2416_p12 = scmp.ne.s32.totalorder %s1593_s1, %s2415_s11  ;;  %p2421_p0 = scmp.lt.s32.totalorder %s2415_s11, %s2415_s11 }
 0x8c7   :  { %p2422_p1 = por %p2421_p0, %p2420_p13 }
 0x8c9   :  { %p2423_p2 = pnand %p2422_p1, %p2416_p12 }
 0x8cb   :  { %2426 = shalt.err (!%p2423_p2)
}
 0x8cc   :  { %s2917_s29 = sld [smem:[#allocation18_spill]] }
 0x8d2   :  { %s2427_s12 = scalar_lea.hbm %s2917_s29, 256 }
 0x8d3   :  { %p2428_p3 = scmp.ne.s32.totalorder %s2917_s29, %s2427_s12  ;;  %p2431_p4 = scmp.lt.u32.totalorder %s2427_s12, %s2917_s29 }
 0x8d5   :  { %p2433_p5 = pnand %p2431_p4, %p2428_p3 }
 0x8d7   :  { %2436 = shalt.err (!%p2433_p5)
}
 0x8d8   :  { %1595 = dma.vmem_to_hbm [thread:$0]  %s1593_s1, 256, %s2917_s29, [#allocation10]  }
 0x8d9   :  { %2441 = dma.done.wait [#allocation4], 128  }
 0x8da   :  { %2442 = vsyncadd [#allocation4], 4294967168 }
 0x8db   :  { %2443 = dma.done.wait [#allocation10], 512  }
 0x8dc   :  { %2444 = vsyncadd [#allocation10], 4294966784 }
 0x8dd   :  { %1607 = vsyncpa [#allocation3], 1 }
 0x8de   :  { %1608 = vsyncpa [#allocation6], 1 }
 0x8df   :  { %1609 = vsyncpa [#allocation4], 1 }
 0x8e0   :  { %1610 = vsyncpa [#allocation10], 1 }

</bundles_post_ra>
